<compile_context>
chip_gen: v6e
topology: v6e:2x2x1
jax: 0.10.0
libtpu: 0.0.40
codegen_flags: <defaults>
</compile_context>

<pallas_src>
import numpy as np
import jax
import jax.numpy as jnp
from jax.experimental import pallas as pl
from jax.experimental.pallas import tpu as pltpu


SWIN_DIM = 768
RESNET_DIM = 512
HIDDEN = 512
COMBINED = SWIN_DIM + RESNET_DIM           # 1280
POOL = 7
POOL_DIM = 3 * POOL * POOL                 # 147 pooled features from the backbone stubs
POOL_DIM_PAD = 152                         # padded to a sublane multiple (8)
NC_PAD = 128                               # lane-dense padded FC output width
GATES_PER_DIR = 3 * HIDDEN                 # pruned gates per direction: [i, g, o]


# ----------------------------------------------------------------------------
# Host-side frontend matrix:
#   F.interpolate(x, (224,224), bilinear, align_corners=False) fused with the
#   backbone-stub 32x32 average pool, expressed as a single matrix:
#     pooled_flat[b] = x_flat[b] @ M,   M = blockdiag_C( kron(A^T, Bt) )
#   with A = Ph @ Rh (7, H) and Bt = Rw^T @ Pw^T (W, 7).
# ----------------------------------------------------------------------------
def _interp_matrix(in_size, out_size):
    """Row-interpolation matrix matching F.interpolate(bilinear, align_corners=False)."""
    scale = in_size / out_size
    dst = np.arange(out_size, dtype=np.float64)
    src = np.clip((dst + 0.5) * scale - 0.5, 0.0, in_size - 1)
    x0 = np.floor(src).astype(np.int64)
    x1 = np.minimum(x0 + 1, in_size - 1)
    w1 = src - x0
    w0 = 1.0 - w1
    m = np.zeros((out_size, in_size), dtype=np.float64)
    np.add.at(m, (np.arange(out_size), x0), w0)
    np.add.at(m, (np.arange(out_size), x1), w1)
    return m


def _pool_matrix(out_size, factor):
    """Average-pool matrix (out_size, out_size*factor)."""
    m = np.zeros((out_size, out_size * factor), dtype=np.float64)
    for i in range(out_size):
        m[i, i * factor:(i + 1) * factor] = 1.0 / factor
    return m


def make_frontend_matrix(C, H, W, out_hw=224, pool=POOL):
    assert C == 3
    factor = out_hw // pool
    rh = _interp_matrix(H, out_hw)             # (224, H)
    rw = _interp_matrix(W, out_hw)             # (224, W)
    ph = _pool_matrix(pool, factor)            # (7, 224)
    a = ph @ rh                                # (7, H)
    bt = rw.T @ ph.T                           # (W, 7)
    m_c = np.kron(a.T, bt)                     # (H*W, 49):  m_c[h*W+w, i*7+j] = A[i,h]*Bt[w,j]
    m = np.zeros((C * H * W, POOL_DIM_PAD), dtype=np.float64)
    for c in range(C):
        m[c * H * W:(c + 1) * H * W, c * pool * pool:(c + 1) * pool * pool] = m_c
    return jnp.asarray(m.astype(np.float32))   # (C*H*W, 152), last 5 columns zero


# ----------------------------------------------------------------------------
# Fused forward kernel.  Grid axis 0 = LSTM direction (0: forward, 1: reverse),
# marked "parallel" so the two directions land on v7x's two TensorCores.
# Per grid step:
#   pooled = x_flat @ M                                    (resize + avg-pool)
#   gates  = pooled @ W_gates[:, dir] + b_gates[:, dir]    (stubs + LSTM folded)
#   h      = sigmoid(o) * tanh(sigmoid(i) * tanh(g))       (seq_len 1, zero state)
#   part   = h @ W_fc[dir-half]                            (FC half-matmul)
# The two (B, 128) partials are summed (+ bias) outside and sliced to num_classes.
# ----------------------------------------------------------------------------
def _fused_forward_kernel(x_ref, m_ref, wg_ref, bg_ref, wfc_ref, o_ref):
    # x_ref: (B, CHW) f32, m_ref: (CHW, 152) f32, wg_ref: (152, 1536) bf16,
    # bg_ref: (1, 1536) f32, wfc_ref: (512, 128) bf16, o_ref: (1, B, 128) f32.
    pooled = jnp.dot(x_ref[...], m_ref[...],
                     preferred_element_type=jnp.float32)            # (B, 152)
    gates = jnp.dot(pooled.astype(jnp.bfloat16), wg_ref[...],
                    preferred_element_type=jnp.float32) + bg_ref[...]  # (B, 1536)

    H = HIDDEN
    i = jax.nn.sigmoid(gates[:, 0:H])
    g = jnp.tanh(gates[:, H:2 * H])
    o = jax.nn.sigmoid(gates[:, 2 * H:3 * H])
    h = o * jnp.tanh(i * g)                    # c_prev = 0, forget gate dead => c = i*g

    o_ref[0] = jnp.dot(h.astype(jnp.bfloat16), wfc_ref[...],
                       preferred_element_type=jnp.float32).astype(o_ref.dtype)


def fused_forward(x_flat, m, w_gates, b_gates, w_fc):
    B, CHW = x_flat.shape
    KP = m.shape[1]
    return pl.pallas_call(
        _fused_forward_kernel,
        out_shape=jax.ShapeDtypeStruct((2, B, NC_PAD), jnp.float32),
        grid=(2,),
        in_specs=[
            pl.BlockSpec((B, CHW), lambda d: (0, 0)),                # features (resident)
            pl.BlockSpec((CHW, KP), lambda d: (0, 0)),               # Kronecker frontend
            pl.BlockSpec((KP, GATES_PER_DIR), lambda d: (0, d)),     # this direction's gates
            pl.BlockSpec((1, GATES_PER_DIR), lambda d: (0, d)),      # this direction's bias
            pl.BlockSpec((HIDDEN, NC_PAD), lambda d: (d, 0)),        # FC half for direction d
        ],
        out_specs=pl.BlockSpec((1, B, NC_PAD), lambda d: (d, 0, 0)),
        compiler_params=pltpu.CompilerParams(dimension_semantics=("parallel",)),
    )(x_flat, m, w_gates, b_gates, w_fc)


# ----------------------------------------------------------------------------
# Parameter init (deterministic, synthetic) with host-side weight folding
# ----------------------------------------------------------------------------
def init_params(key, num_classes):
    assert num_classes <= NC_PAD
    ks = jax.random.split(key, 8)
    k_lstm = 1.0 / np.sqrt(HIDDEN)
    k_fc = 1.0 / np.sqrt(2 * HIDDEN)
    u = lambda k, shape, s: jax.random.uniform(k, shape, jnp.float32, -s, s)

    # TODO(synk): Swin + ResNet34 backbones not implemented in Pallas; deterministic
    #             linear stand-ins producing the same 768 / 512 feature dims.
    w_swin = u(ks[0], (POOL_DIM, SWIN_DIM), 0.1)
    b_swin = u(ks[1], (SWIN_DIM,), 0.1)
    w_res = u(ks[2], (POOL_DIM, RESNET_DIM), 0.1)
    b_res = u(ks[3], (RESNET_DIM,), 0.1)

    # Fused BiLSTM input weights: per direction pre-transposed to (1280, 3H) with the
    # dead forget-gate columns pruned (PyTorch gate order i,f,g,o -> keep i,g,o),
    # fwd || rev concatenated along columns -> (1280, 3072).
    w_lstm = u(ks[4], (COMBINED, 2 * GATES_PER_DIR), k_lstm)
    # bias = bias_ih + bias_hh, same pruning / fusion -> (1, 3072).
    b_lstm = u(ks[5], (1, 2 * GATES_PER_DIR), 2.0 * k_lstm)

    # Fold the linear backbone stubs into the gate weights (valid only while the
    # backbones remain linear stubs):
    #   gates = pooled @ ([W_swin|W_res] @ W_lstm) + ([b_swin|b_res] @ W_lstm + b_lstm)
    w_stub = jnp.concatenate([w_swin, w_res], axis=1)                 # (147, 1280)
    b_stub = jnp.concatenate([b_swin, b_res])[None, :]                # (1, 1280)
    w_gates = (jnp.zeros((POOL_DIM_PAD, 2 * GATES_PER_DIR), jnp.float32)
               .at[:POOL_DIM].set(w_stub @ w_lstm)).astype(jnp.bfloat16)  # (152, 3072)
    b_gates = b_stub @ w_lstm + b_lstm                                # (1, 3072) f32

    # FC: pre-transposed, columns padded to 128 lanes, stored bf16.
    w_fc = u(ks[6], (2 * HIDDEN, num_classes), k_fc)
    b_fc = u(ks[7], (1, num_classes), k_fc)
    w_fc_pad = (jnp.zeros((2 * HIDDEN, NC_PAD), jnp.float32)
                .at[:, :num_classes].set(w_fc)).astype(jnp.bfloat16)
    b_fc_pad = jnp.zeros((1, NC_PAD), jnp.float32).at[:, :num_classes].set(b_fc)

    return {"w_gates": w_gates, "b_gates": b_gates, "w_fc": w_fc_pad, "b_fc": b_fc_pad}


# ----------------------------------------------------------------------------
# Full forward
# ----------------------------------------------------------------------------
def hybrid_forward(x, params, num_classes):
    B, C, H, W = x.shape
    # TODO(synk): the fused Kronecker frontend keeps the full (C*H*W, 152) matrix in
    # VMEM — fine for demo-sized frames; for real 224x224 frames fall back to the
    # separable A @ x @ Bt form (or stream the frontend with its own grid).
    m = make_frontend_matrix(C, H, W)                                 # (C*H*W, 152)
    x_flat = x.reshape(B, C * H * W)

    partials = fused_forward(x_flat, m, params["w_gates"],
                             params["b_gates"], params["w_fc"])       # (2, B, 128)
    logits = partials[0] + partials[1] + params["b_fc"]               # (B, 128)
    return logits[:, :num_classes]                                    # (B, num_classes)


if __name__ == "__main__":
    num_classes = 10
    key = jax.random.PRNGKey(0)
    k_x, k_p = jax.random.split(key)
    x = jax.random.normal(k_x, (2, 3, 16, 16), jnp.float32)           # small NCHW input
    params = init_params(k_p, num_classes)

    out = hybrid_forward(x, params, num_classes)
    out = jax.block_until_ready(out)
    assert out.shape == (2, num_classes) and out.dtype == jnp.float32
    print("KERNEL_OK")
</pallas_src>

<mosaic_0001>
module attributes {stable_mosaic.version = 11 : i64} {
  func.func @_fused_forward_kernel(%arg0: i32, %arg1: memref<2x768xf32, #tpu.memory_space<vmem>>, %arg2: memref<768x152xf32, #tpu.memory_space<vmem>>, %arg3: memref<152x1536xbf16, #tpu.memory_space<vmem>>, %arg4: memref<1x1536xf32, #tpu.memory_space<vmem>>, %arg5: memref<512x128xbf16, #tpu.memory_space<vmem>>, %arg6: memref<1x2x128xf32, #tpu.memory_space<vmem>>) attributes {dimension_semantics = [#tpu.dimension_semantics<parallel>], iteration_bounds = array<i64: 2>, scalar_prefetch = 0 : i64, scratch_operands = 0 : i64, tpu.core_type = #tpu.core_type<tc>, window_params = [{pipeline_mode = #tpu.pipeline_mode<synchronous>, transform_indices = @transform_0, window_bounds = array<i64: 2, 768>}, {pipeline_mode = #tpu.pipeline_mode<synchronous>, transform_indices = @transform_1, window_bounds = array<i64: 768, 152>}, {transform_indices = @transform_2, window_bounds = array<i64: 152, 1536>}, {transform_indices = @transform_3, window_bounds = array<i64: 1, 1536>}, {transform_indices = @transform_4, window_bounds = array<i64: 512, 128>}, {transform_indices = @transform_5, window_bounds = array<i64: 1, 2, 128>}]} {
    %c0 = arith.constant 0 : index
    %c0_0 = arith.constant 0 : index
    %0 = vector.load %arg1[%c0, %c0_0] : memref<2x768xf32, #tpu.memory_space<vmem>>, vector<2x768xf32>
    %c0_1 = arith.constant 0 : index
    %c0_2 = arith.constant 0 : index
    %1 = vector.load %arg2[%c0_1, %c0_2] : memref<768x152xf32, #tpu.memory_space<vmem>>, vector<768x152xf32>
    %cst = arith.constant dense<0.000000e+00> : vector<2x152xf32>
    %2 = tpu.matmul %0, %1, %cst {dimension_numbers = #tpu.dot_dimension_numbers<[1], [0], [0], [1], [0, 0, 1, 1], [], []>} : vector<2x768xf32>, vector<768x152xf32>, vector<2x152xf32> -> vector<2x152xf32>
    %3 = arith.truncf %2 : vector<2x152xf32> to vector<2x152xbf16>
    %c0_3 = arith.constant 0 : index
    %c0_4 = arith.constant 0 : index
    %4 = vector.load %arg3[%c0_3, %c0_4] : memref<152x1536xbf16, #tpu.memory_space<vmem>>, vector<152x1536xbf16>
    %cst_5 = arith.constant dense<0.000000e+00> : vector<2x1536xf32>
    %5 = tpu.matmul %3, %4, %cst_5 {dimension_numbers = #tpu.dot_dimension_numbers<[1], [0], [0], [1], [0, 0, 1, 1], [], []>} : vector<2x152xbf16>, vector<152x1536xbf16>, vector<2x1536xf32> -> vector<2x1536xf32>
    %c0_6 = arith.constant 0 : index
    %c0_7 = arith.constant 0 : index
    %6 = vector.load %arg4[%c0_6, %c0_7] : memref<1x1536xf32, #tpu.memory_space<vmem>>, vector<1x1536xf32>
    %7 = vector.broadcast %6 : vector<1x1536xf32> to vector<2x1536xf32>
    %8 = arith.addf %5, %7 : vector<2x1536xf32>
    %9 = vector.extract_strided_slice %8 {offsets = [0, 0], sizes = [2, 512], strides = [1, 1]} : vector<2x1536xf32> to vector<2x512xf32>
    %10 = arith.negf %9 : vector<2x512xf32>
    %11 = math.exp %10 : vector<2x512xf32>
    %cst_8 = arith.constant 1.000000e+00 : f32
    %12 = vector.broadcast %cst_8 : f32 to vector<2x512xf32>
    %13 = arith.addf %12, %11 : vector<2x512xf32>
    %14 = arith.divf %12, %13 : vector<2x512xf32>
    %15 = vector.extract_strided_slice %8 {offsets = [0, 512], sizes = [2, 512], strides = [1, 1]} : vector<2x1536xf32> to vector<2x512xf32>
    %16 = math.tanh %15 : vector<2x512xf32>
    %17 = vector.extract_strided_slice %8 {offsets = [0, 1024], sizes = [2, 512], strides = [1, 1]} : vector<2x1536xf32> to vector<2x512xf32>
    %18 = arith.negf %17 : vector<2x512xf32>
    %19 = math.exp %18 : vector<2x512xf32>
    %cst_9 = arith.constant 1.000000e+00 : f32
    %20 = vector.broadcast %cst_9 : f32 to vector<2x512xf32>
    %21 = arith.addf %20, %19 : vector<2x512xf32>
    %22 = arith.divf %20, %21 : vector<2x512xf32>
    %23 = arith.mulf %14, %16 : vector<2x512xf32>
    %24 = math.tanh %23 : vector<2x512xf32>
    %25 = arith.mulf %22, %24 : vector<2x512xf32>
    %26 = arith.truncf %25 : vector<2x512xf32> to vector<2x512xbf16>
    %c0_10 = arith.constant 0 : index
    %c0_11 = arith.constant 0 : index
    %27 = vector.load %arg5[%c0_10, %c0_11] : memref<512x128xbf16, #tpu.memory_space<vmem>>, vector<512x128xbf16>
    %cst_12 = arith.constant dense<0.000000e+00> : vector<2x128xf32>
    %28 = tpu.matmul %26, %27, %cst_12 {dimension_numbers = #tpu.dot_dimension_numbers<[1], [0], [0], [1], [0, 0, 1, 1], [], []>} : vector<2x512xbf16>, vector<512x128xbf16>, vector<2x128xf32> -> vector<2x128xf32>
    %c0_13 = arith.constant 0 : index
    %c0_14 = arith.constant 0 : index
    %c0_15 = arith.constant 0 : index
    %29 = vector.load %arg6[%c0_13, %c0_14, %c0_15] : memref<1x2x128xf32, #tpu.memory_space<vmem>>, vector<1x2x128xf32>
    %30 = vector.shape_cast %29 : vector<1x2x128xf32> to vector<2x128xf32>
    %31 = vector.shape_cast %28 : vector<2x128xf32> to vector<1x2x128xf32>
    tpu.vector_store %arg6[%c0_13, %c0_14, %c0_15], %31 {strides = array<i32>} : memref<1x2x128xf32, #tpu.memory_space<vmem>>, vector<1x2x128xf32>,
    return
  }
  func.func @transform_0(%arg0: i32) -> (i32, i32) {
    %c0_i32 = arith.constant 0 : i32
    %c0_i32_0 = arith.constant 0 : i32
    %c0_i32_1 = arith.constant 0 : i32
    return %c0_i32, %c0_i32_0 : i32, i32
  }
  func.func @transform_1(%arg0: i32) -> (i32, i32) {
    %c0_i32 = arith.constant 0 : i32
    %c0_i32_0 = arith.constant 0 : i32
    %c0_i32_1 = arith.constant 0 : i32
    return %c0_i32, %c0_i32_0 : i32, i32
  }
  func.func @transform_2(%arg0: i32) -> (i32, i32) {
    %c0_i32 = arith.constant 0 : i32
    %c0_i32_0 = arith.constant 0 : i32
    return %c0_i32, %arg0 : i32, i32
  }
  func.func @transform_3(%arg0: i32) -> (i32, i32) {
    %c0_i32 = arith.constant 0 : i32
    %c0_i32_0 = arith.constant 0 : i32
    return %c0_i32, %arg0 : i32, i32
  }
  func.func @transform_4(%arg0: i32) -> (i32, i32) {
    %c0_i32 = arith.constant 0 : i32
    %c0_i32_0 = arith.constant 0 : i32
    return %arg0, %c0_i32 : i32, i32
  }
  func.func @transform_5(%arg0: i32) -> (i32, i32, i32) {
    %c0_i32 = arith.constant 0 : i32
    %c0_i32_0 = arith.constant 0 : i32
    %c0_i32_1 = arith.constant 0 : i32
    return %arg0, %c0_i32, %c0_i32_0 : i32, i32, i32
  }
}

</mosaic_0001>

<bundles_post_ra>
// kernel: tpu_custom_call.1
= control target key start
LH: loop header
LB: loop body
LE: loop exit
PB: predicated region body
PF: predicated region fallthrough
CT: control target
= control target key end

     0   :  { %10 = vsyncpa [#allocation4], 0  ;;  %s4263_s0 = inlined_call_operand.vmem [shape: f32[2,768], index: 0, kind: input, shape index: {}]   ;;  %s4264_s1 = inlined_call_operand.vmem [shape: f32[768,152], index: 1, kind: input, shape index: {}]   ;;  %s4265_s2 = inlined_call_operand.vmem [shape: bf16[152,3072], index: 2, kind: input, shape index: {}]   ;;  %s4266_s3 = inlined_call_operand.vmem [shape: f32[1,3072], index: 3, kind: input, shape index: {}]   ;;  %s4267_s4 = inlined_call_operand.vmem [shape: bf16[1024,128], index: 4, kind: input, shape index: {}]   ;;  %s4268_s5 = inlined_call_operand.hbm [shape: f32[2,2,128], index: 5, kind: output, shape index: {}]  }
   0x1   :  { %12 = vsyncpa [#allocation4 + $0x1], 0  ;;  %s3115_s18 = smov 0   ;;  %s3117_s19 = smov 0  }
   0x2   :  { %s3119_s20 = smov 0   ;;  %s3121_s21 = smov 0  }
   0x3 LB: > { %s3136_s22 = sadd.s32 4294967295, %s3081_s21   ;;  %s2494_s23 = sadd.s32 4294967294, %s3081_s21   ;;  %s3081_s21 = sphi %s3121_s21, %s4274_s21   ;;  %s3077_s20 = sphi %s3119_s20, %s4273_s20   ;;  %s3073_s19 = sphi %s3117_s19, %s4272_s19   ;;  %s3069_s18 = sphi %s3115_s18, %s4271_s18  }
   0x4   : > { %s3140_s24 = sadd.s32 1, %s3081_s21   ;;  %s67_s25 = sadd.s32 1, %s3077_s20 }
   0x5   : > { %s64_s26 = ssub.s32 %s3081_s21, %s3140_s24  ;;  %p74_p0 = scmp.ne.s32.totalorder %s3077_s20, %s3073_s19 }
   0x6   : > { %p65_p1 = scmp.eq.s32.totalorder %s64_s26, 0  ;;  %p75_p2 = scmp.eq.s32.totalorder %s3081_s21, 0 }
   0x7   : > { %p156_p3 = scmp.eq.s32.totalorder %s3136_s22, 1  ;;  %p161_p4 = scmp.ne.s32.totalorder %s3073_s19, %s3069_s18 }
   0x8   : > { %s3152_s27 = scalar_select %p65_p1, %s3077_s20, %s67_s25  }
   0x9   : > { %p76_p5 = por %p75_p2, %p74_p0  ;;  %p3154_p6 = por %p156_p3, %p74_p0 }
   0xa   : > { %p162_p7 = scmp.eq.s32.totalorder %s2494_s23, 1  ;;  %p2496_p9 = scmp.ge.s32.totalorder %s3081_s21, 2 }
   0xc   : > { %p3158_p8 = por %p162_p7, %p161_p4  ;;  %184 = sbr.rel (%p2496_p9) target bundleno = 79 (0x4f), region = 24 }
  0x11   : > { %187 = sbr.rel (!%p76_p5) target bundleno = 79 (0x4f), region = 28  ;;  %s189_s30 = sand.u32 (%p76_p5), 1, %s3077_s20  }
  0x12   : > { %s2679_s6 = smul.u32 (%p76_p5), 48, %s3081_s21 }
  0x13   : > { %s2724_s7 = smul.u32 (%p76_p5), 912, %s189_s30 }
  0x14   : > { %s3170_s10 = scalar_lea.vmem (%p76_p5), %s4265_s2, %s2679_s6 }
  0x15   : > { %v207_v0 = vld [vmem:[%s3170_s10] sm:$0xff] (%p76_p5)  ;;  %v209_v1 = vld [vmem:[%s3170_s10 + $0x8] sm:$0xff] (%p76_p5)  ;;  %v211_v2 = vld [vmem:[%s3170_s10 + $0x10] sm:$0xff] (%p76_p5)  ;;  %s3175_s11 = scalar_lea.vmem (%p76_p5), [#allocation2], %s2724_s7 }
  0x16   : > { %208 = vst [vmem:[%s3175_s11] sm:$0xff] %v207_v0  ;;  %210 = vst [vmem:[%s3175_s11 + $0x8] sm:$0xff] %v209_v1  ;;  %v213_v3 = vld [vmem:[%s3170_s10 + $0x18] sm:$0xff]  ;;  %v215_v4 = vld [vmem:[%s3170_s10 + $0x20] sm:$0xff] }
  0x17   : > { %212 = vst [vmem:[%s3175_s11 + $0x10] sm:$0xff] %v211_v2  ;;  %v217_v5 = vld [vmem:[%s3170_s10 + $0x28] sm:$0xff]  ;;  %214 = vst [vmem:[%s3175_s11 + $0x18] sm:$0xff] %v213_v3  ;;  %v219_v6 = vld [vmem:[%s3170_s10 + $0x60] sm:$0xff] }
  0x18   : > { %216 = vst [vmem:[%s3175_s11 + $0x20] sm:$0xff] %v215_v4  ;;  %218 = vst [vmem:[%s3175_s11 + $0x28] sm:$0xff] %v217_v5  ;;  %v221_v7 = vld [vmem:[%s3170_s10 + $0x68] sm:$0xff]  ;;  %v223_v8 = vld [vmem:[%s3170_s10 + $0x70] sm:$0xff] }
  0x19   : > { %220 = vst [vmem:[%s3175_s11 + $0x30] sm:$0xff] %v219_v6  ;;  %222 = vst [vmem:[%s3175_s11 + $0x38] sm:$0xff] %v221_v7  ;;  %v225_v9 = vld [vmem:[%s3170_s10 + $0x78] sm:$0xff]  ;;  %v227_v10 = vld [vmem:[%s3170_s10 + $0x80] sm:$0xff] }
  0x1a   : > { %224 = vst [vmem:[%s3175_s11 + $0x40] sm:$0xff] %v223_v8  ;;  %v229_v11 = vld [vmem:[%s3170_s10 + $0x88] sm:$0xff]  ;;  %226 = vst [vmem:[%s3175_s11 + $0x48] sm:$0xff] %v225_v9  ;;  %v231_v12 = vld [vmem:[%s3170_s10 + $0xc0] sm:$0xff] }
  0x1b   : > { %228 = vst [vmem:[%s3175_s11 + $0x50] sm:$0xff] %v227_v10  ;;  %230 = vst [vmem:[%s3175_s11 + $0x58] sm:$0xff] %v229_v11  ;;  %v233_v13 = vld [vmem:[%s3170_s10 + $0xc8] sm:$0xff]  ;;  %v235_v14 = vld [vmem:[%s3170_s10 + $0xd0] sm:$0xff] }
  0x1c   : > { %232 = vst [vmem:[%s3175_s11 + $0x60] sm:$0xff] %v231_v12  ;;  %234 = vst [vmem:[%s3175_s11 + $0x68] sm:$0xff] %v233_v13  ;;  %v237_v15 = vld [vmem:[%s3170_s10 + $0xd8] sm:$0xff]  ;;  %v239_v16 = vld [vmem:[%s3170_s10 + $0xe0] sm:$0xff] }
  0x1d   : > { %236 = vst [vmem:[%s3175_s11 + $0x70] sm:$0xff] %v235_v14  ;;  %v241_v17 = vld [vmem:[%s3170_s10 + $0xe8] sm:$0xff]  ;;  %238 = vst [vmem:[%s3175_s11 + $0x78] sm:$0xff] %v237_v15  ;;  %v243_v18 = vld [vmem:[%s3170_s10 + $0x120] sm:$0xff] }
  0x1e   : > { %240 = vst [vmem:[%s3175_s11 + $0x80] sm:$0xff] %v239_v16  ;;  %242 = vst [vmem:[%s3175_s11 + $0x88] sm:$0xff] %v241_v17  ;;  %v245_v19 = vld [vmem:[%s3170_s10 + $0x128] sm:$0xff]  ;;  %v247_v20 = vld [vmem:[%s3170_s10 + $0x130] sm:$0xff] }
  0x1f   : > { %244 = vst [vmem:[%s3175_s11 + $0x90] sm:$0xff] %v243_v18  ;;  %246 = vst [vmem:[%s3175_s11 + $0x98] sm:$0xff] %v245_v19  ;;  %v249_v21 = vld [vmem:[%s3170_s10 + $0x138] sm:$0xff]  ;;  %v251_v22 = vld [vmem:[%s3170_s10 + $0x140] sm:$0xff] }
  0x20   : > { %248 = vst [vmem:[%s3175_s11 + $0xa0] sm:$0xff] %v247_v20  ;;  %v253_v23 = vld [vmem:[%s3170_s10 + $0x148] sm:$0xff]  ;;  %250 = vst [vmem:[%s3175_s11 + $0xa8] sm:$0xff] %v249_v21  ;;  %v255_v24 = vld [vmem:[%s3170_s10 + $0x180] sm:$0xff] }
  0x21   : > { %252 = vst [vmem:[%s3175_s11 + $0xb0] sm:$0xff] %v251_v22  ;;  %254 = vst [vmem:[%s3175_s11 + $0xb8] sm:$0xff] %v253_v23  ;;  %v257_v25 = vld [vmem:[%s3170_s10 + $0x188] sm:$0xff]  ;;  %v259_v26 = vld [vmem:[%s3170_s10 + $0x190] sm:$0xff] }
  0x22   : > { %256 = vst [vmem:[%s3175_s11 + $0xc0] sm:$0xff] %v255_v24  ;;  %258 = vst [vmem:[%s3175_s11 + $0xc8] sm:$0xff] %v257_v25  ;;  %v261_v27 = vld [vmem:[%s3170_s10 + $0x198] sm:$0xff]  ;;  %v263_v28 = vld [vmem:[%s3170_s10 + $0x1a0] sm:$0xff] }
  0x23   : > { %260 = vst [vmem:[%s3175_s11 + $0xd0] sm:$0xff] %v259_v26  ;;  %v265_v29 = vld [vmem:[%s3170_s10 + $0x1a8] sm:$0xff]  ;;  %262 = vst [vmem:[%s3175_s11 + $0xd8] sm:$0xff] %v261_v27  ;;  %v267_v30 = vld [vmem:[%s3170_s10 + $0x1e0] sm:$0xff] }
  0x24   : > { %264 = vst [vmem:[%s3175_s11 + $0xe0] sm:$0xff] %v263_v28  ;;  %266 = vst [vmem:[%s3175_s11 + $0xe8] sm:$0xff] %v265_v29  ;;  %v269_v31 = vld [vmem:[%s3170_s10 + $0x1e8] sm:$0xff]  ;;  %v271_v32 = vld [vmem:[%s3170_s10 + $0x1f0] sm:$0xff] }
  0x25   : > { %268 = vst [vmem:[%s3175_s11 + $0xf0] sm:$0xff] %v267_v30  ;;  %270 = vst [vmem:[%s3175_s11 + $0xf8] sm:$0xff] %v269_v31  ;;  %v273_v33 = vld [vmem:[%s3170_s10 + $0x1f8] sm:$0xff]  ;;  %v275_v34 = vld [vmem:[%s3170_s10 + $0x200] sm:$0xff] }
  0x26   : > { %272 = vst [vmem:[%s3175_s11 + $0x100] sm:$0xff] %v271_v32  ;;  %v277_v35 = vld [vmem:[%s3170_s10 + $0x208] sm:$0xff]  ;;  %274 = vst [vmem:[%s3175_s11 + $0x108] sm:$0xff] %v273_v33  ;;  %v279_v36 = vld [vmem:[%s3170_s10 + $0x240] sm:$0xff] }
  0x27   : > { %276 = vst [vmem:[%s3175_s11 + $0x110] sm:$0xff] %v275_v34  ;;  %278 = vst [vmem:[%s3175_s11 + $0x118] sm:$0xff] %v277_v35  ;;  %v281_v37 = vld [vmem:[%s3170_s10 + $0x248] sm:$0xff]  ;;  %v283_v38 = vld [vmem:[%s3170_s10 + $0x250] sm:$0xff] }
  0x28   : > { %280 = vst [vmem:[%s3175_s11 + $0x120] sm:$0xff] %v279_v36  ;;  %282 = vst [vmem:[%s3175_s11 + $0x128] sm:$0xff] %v281_v37  ;;  %v285_v39 = vld [vmem:[%s3170_s10 + $0x258] sm:$0xff]  ;;  %v287_v40 = vld [vmem:[%s3170_s10 + $0x260] sm:$0xff] }
  0x29   : > { %284 = vst [vmem:[%s3175_s11 + $0x130] sm:$0xff] %v283_v38  ;;  %v289_v41 = vld [vmem:[%s3170_s10 + $0x268] sm:$0xff]  ;;  %286 = vst [vmem:[%s3175_s11 + $0x138] sm:$0xff] %v285_v39  ;;  %v291_v42 = vld [vmem:[%s3170_s10 + $0x2a0] sm:$0xff] }
  0x2a   : > { %288 = vst [vmem:[%s3175_s11 + $0x140] sm:$0xff] %v287_v40  ;;  %290 = vst [vmem:[%s3175_s11 + $0x148] sm:$0xff] %v289_v41  ;;  %v293_v43 = vld [vmem:[%s3170_s10 + $0x2a8] sm:$0xff]  ;;  %v295_v44 = vld [vmem:[%s3170_s10 + $0x2b0] sm:$0xff] }
  0x2b   : > { %292 = vst [vmem:[%s3175_s11 + $0x150] sm:$0xff] %v291_v42  ;;  %294 = vst [vmem:[%s3175_s11 + $0x158] sm:$0xff] %v293_v43  ;;  %v297_v45 = vld [vmem:[%s3170_s10 + $0x2b8] sm:$0xff]  ;;  %v299_v46 = vld [vmem:[%s3170_s10 + $0x2c0] sm:$0xff] }
  0x2c   : > { %296 = vst [vmem:[%s3175_s11 + $0x160] sm:$0xff] %v295_v44  ;;  %v301_v47 = vld [vmem:[%s3170_s10 + $0x2c8] sm:$0xff]  ;;  %298 = vst [vmem:[%s3175_s11 + $0x168] sm:$0xff] %v297_v45  ;;  %v303_v48 = vld [vmem:[%s3170_s10 + $0x300] sm:$0xff] }
  0x2d   : > { %300 = vst [vmem:[%s3175_s11 + $0x170] sm:$0xff] %v299_v46  ;;  %302 = vst [vmem:[%s3175_s11 + $0x178] sm:$0xff] %v301_v47  ;;  %v305_v49 = vld [vmem:[%s3170_s10 + $0x308] sm:$0xff]  ;;  %v307_v50 = vld [vmem:[%s3170_s10 + $0x310] sm:$0xff] }
  0x2e   : > { %304 = vst [vmem:[%s3175_s11 + $0x180] sm:$0xff] %v303_v48  ;;  %306 = vst [vmem:[%s3175_s11 + $0x188] sm:$0xff] %v305_v49  ;;  %v309_v51 = vld [vmem:[%s3170_s10 + $0x318] sm:$0xff]  ;;  %v311_v52 = vld [vmem:[%s3170_s10 + $0x320] sm:$0xff] }
  0x2f   : > { %308 = vst [vmem:[%s3175_s11 + $0x190] sm:$0xff] %v307_v50  ;;  %v313_v53 = vld [vmem:[%s3170_s10 + $0x328] sm:$0xff]  ;;  %310 = vst [vmem:[%s3175_s11 + $0x198] sm:$0xff] %v309_v51  ;;  %v315_v54 = vld [vmem:[%s3170_s10 + $0x360] sm:$0xff] }
  0x30   : > { %312 = vst [vmem:[%s3175_s11 + $0x1a0] sm:$0xff] %v311_v52  ;;  %314 = vst [vmem:[%s3175_s11 + $0x1a8] sm:$0xff] %v313_v53  ;;  %v317_v55 = vld [vmem:[%s3170_s10 + $0x368] sm:$0xff]  ;;  %v319_v56 = vld [vmem:[%s3170_s10 + $0x370] sm:$0xff] }
  0x31   : > { %316 = vst [vmem:[%s3175_s11 + $0x1b0] sm:$0xff] %v315_v54  ;;  %318 = vst [vmem:[%s3175_s11 + $0x1b8] sm:$0xff] %v317_v55  ;;  %v321_v57 = vld [vmem:[%s3170_s10 + $0x378] sm:$0xff]  ;;  %v323_v58 = vld [vmem:[%s3170_s10 + $0x380] sm:$0xff] }
  0x32   : > { %320 = vst [vmem:[%s3175_s11 + $0x1c0] sm:$0xff] %v319_v56  ;;  %v325_v59 = vld [vmem:[%s3170_s10 + $0x388] sm:$0xff]  ;;  %322 = vst [vmem:[%s3175_s11 + $0x1c8] sm:$0xff] %v321_v57  ;;  %v327_v60 = vld [vmem:[%s3170_s10 + $0x3c0] sm:$0xff] }
  0x33   : > { %324 = vst [vmem:[%s3175_s11 + $0x1d0] sm:$0xff] %v323_v58  ;;  %326 = vst [vmem:[%s3175_s11 + $0x1d8] sm:$0xff] %v325_v59  ;;  %v329_v61 = vld [vmem:[%s3170_s10 + $0x3c8] sm:$0xff]  ;;  %v331_v62 = vld [vmem:[%s3170_s10 + $0x3d0] sm:$0xff] }
  0x34   : > { %328 = vst [vmem:[%s3175_s11 + $0x1e0] sm:$0xff] %v327_v60  ;;  %330 = vst [vmem:[%s3175_s11 + $0x1e8] sm:$0xff] %v329_v61  ;;  %v333_v63 = vld [vmem:[%s3170_s10 + $0x3d8] sm:$0xff]  ;;  %v335_v0 = vld [vmem:[%s3170_s10 + $0x3e0] sm:$0xff] }
  0x35   : > { %332 = vst [vmem:[%s3175_s11 + $0x1f0] sm:$0xff] %v331_v62  ;;  %v337_v1 = vld [vmem:[%s3170_s10 + $0x3e8] sm:$0xff]  ;;  %334 = vst [vmem:[%s3175_s11 + $0x1f8] sm:$0xff] %v333_v63  ;;  %v339_v2 = vld [vmem:[%s3170_s10 + $0x420] sm:$0xff] }
  0x36   : > { %336 = vst [vmem:[%s3175_s11 + $0x200] sm:$0xff] %v335_v0  ;;  %338 = vst [vmem:[%s3175_s11 + $0x208] sm:$0xff] %v337_v1  ;;  %v341_v3 = vld [vmem:[%s3170_s10 + $0x428] sm:$0xff]  ;;  %v343_v4 = vld [vmem:[%s3170_s10 + $0x430] sm:$0xff] }
  0x37   : > { %340 = vst [vmem:[%s3175_s11 + $0x210] sm:$0xff] %v339_v2  ;;  %342 = vst [vmem:[%s3175_s11 + $0x218] sm:$0xff] %v341_v3  ;;  %v345_v5 = vld [vmem:[%s3170_s10 + $0x438] sm:$0xff]  ;;  %v347_v6 = vld [vmem:[%s3170_s10 + $0x440] sm:$0xff] }
  0x38   : > { %344 = vst [vmem:[%s3175_s11 + $0x220] sm:$0xff] %v343_v4  ;;  %v349_v7 = vld [vmem:[%s3170_s10 + $0x448] sm:$0xff]  ;;  %346 = vst [vmem:[%s3175_s11 + $0x228] sm:$0xff] %v345_v5  ;;  %v351_v8 = vld [vmem:[%s3170_s10 + $0x480] sm:$0xff] }
  0x39   : > { %348 = vst [vmem:[%s3175_s11 + $0x230] sm:$0xff] %v347_v6  ;;  %350 = vst [vmem:[%s3175_s11 + $0x238] sm:$0xff] %v349_v7  ;;  %v353_v9 = vld [vmem:[%s3170_s10 + $0x488] sm:$0xff]  ;;  %v355_v10 = vld [vmem:[%s3170_s10 + $0x490] sm:$0xff] }
  0x3a   : > { %352 = vst [vmem:[%s3175_s11 + $0x240] sm:$0xff] %v351_v8  ;;  %354 = vst [vmem:[%s3175_s11 + $0x248] sm:$0xff] %v353_v9  ;;  %v357_v11 = vld [vmem:[%s3170_s10 + $0x498] sm:$0xff]  ;;  %v359_v12 = vld [vmem:[%s3170_s10 + $0x4a0] sm:$0xff] }
  0x3b   : > { %356 = vst [vmem:[%s3175_s11 + $0x250] sm:$0xff] %v355_v10  ;;  %v361_v13 = vld [vmem:[%s3170_s10 + $0x4a8] sm:$0xff]  ;;  %358 = vst [vmem:[%s3175_s11 + $0x258] sm:$0xff] %v357_v11  ;;  %v363_v14 = vld [vmem:[%s3170_s10 + $0x4e0] sm:$0xff] }
  0x3c   : > { %360 = vst [vmem:[%s3175_s11 + $0x260] sm:$0xff] %v359_v12  ;;  %362 = vst [vmem:[%s3175_s11 + $0x268] sm:$0xff] %v361_v13  ;;  %v365_v15 = vld [vmem:[%s3170_s10 + $0x4e8] sm:$0xff]  ;;  %v367_v16 = vld [vmem:[%s3170_s10 + $0x4f0] sm:$0xff] }
  0x3d   : > { %364 = vst [vmem:[%s3175_s11 + $0x270] sm:$0xff] %v363_v14  ;;  %366 = vst [vmem:[%s3175_s11 + $0x278] sm:$0xff] %v365_v15  ;;  %v369_v17 = vld [vmem:[%s3170_s10 + $0x4f8] sm:$0xff]  ;;  %v371_v18 = vld [vmem:[%s3170_s10 + $0x500] sm:$0xff] }
  0x3e   : > { %368 = vst [vmem:[%s3175_s11 + $0x280] sm:$0xff] %v367_v16  ;;  %v373_v19 = vld [vmem:[%s3170_s10 + $0x508] sm:$0xff]  ;;  %370 = vst [vmem:[%s3175_s11 + $0x288] sm:$0xff] %v369_v17  ;;  %v375_v20 = vld [vmem:[%s3170_s10 + $0x540] sm:$0xff] }
  0x3f   : > { %372 = vst [vmem:[%s3175_s11 + $0x290] sm:$0xff] %v371_v18  ;;  %374 = vst [vmem:[%s3175_s11 + $0x298] sm:$0xff] %v373_v19  ;;  %v377_v21 = vld [vmem:[%s3170_s10 + $0x548] sm:$0xff]  ;;  %v379_v22 = vld [vmem:[%s3170_s10 + $0x550] sm:$0xff] }
  0x40   : > { %376 = vst [vmem:[%s3175_s11 + $0x2a0] sm:$0xff] %v375_v20  ;;  %378 = vst [vmem:[%s3175_s11 + $0x2a8] sm:$0xff] %v377_v21  ;;  %v381_v23 = vld [vmem:[%s3170_s10 + $0x558] sm:$0xff]  ;;  %v383_v24 = vld [vmem:[%s3170_s10 + $0x560] sm:$0xff] }
  0x41   : > { %380 = vst [vmem:[%s3175_s11 + $0x2b0] sm:$0xff] %v379_v22  ;;  %v385_v25 = vld [vmem:[%s3170_s10 + $0x568] sm:$0xff]  ;;  %382 = vst [vmem:[%s3175_s11 + $0x2b8] sm:$0xff] %v381_v23  ;;  %v387_v26 = vld [vmem:[%s3170_s10 + $0x5a0] sm:$0xff] }
  0x42   : > { %384 = vst [vmem:[%s3175_s11 + $0x2c0] sm:$0xff] %v383_v24  ;;  %386 = vst [vmem:[%s3175_s11 + $0x2c8] sm:$0xff] %v385_v25  ;;  %v389_v27 = vld [vmem:[%s3170_s10 + $0x5a8] sm:$0xff]  ;;  %v391_v28 = vld [vmem:[%s3170_s10 + $0x5b0] sm:$0xff] }
  0x43   : > { %388 = vst [vmem:[%s3175_s11 + $0x2d0] sm:$0xff] %v387_v26  ;;  %390 = vst [vmem:[%s3175_s11 + $0x2d8] sm:$0xff] %v389_v27  ;;  %v393_v29 = vld [vmem:[%s3170_s10 + $0x5b8] sm:$0xff]  ;;  %v395_v30 = vld [vmem:[%s3170_s10 + $0x5c0] sm:$0xff] }
  0x44   : > { %392 = vst [vmem:[%s3175_s11 + $0x2e0] sm:$0xff] %v391_v28  ;;  %v397_v31 = vld [vmem:[%s3170_s10 + $0x5c8] sm:$0xff]  ;;  %394 = vst [vmem:[%s3175_s11 + $0x2e8] sm:$0xff] %v393_v29  ;;  %v399_v32 = vld [vmem:[%s3170_s10 + $0x600] sm:$0xff] }
  0x45   : > { %396 = vst [vmem:[%s3175_s11 + $0x2f0] sm:$0xff] %v395_v30  ;;  %398 = vst [vmem:[%s3175_s11 + $0x2f8] sm:$0xff] %v397_v31  ;;  %v401_v33 = vld [vmem:[%s3170_s10 + $0x608] sm:$0xff]  ;;  %v403_v34 = vld [vmem:[%s3170_s10 + $0x610] sm:$0xff] }
  0x46   : > { %400 = vst [vmem:[%s3175_s11 + $0x300] sm:$0xff] %v399_v32  ;;  %402 = vst [vmem:[%s3175_s11 + $0x308] sm:$0xff] %v401_v33  ;;  %v405_v35 = vld [vmem:[%s3170_s10 + $0x618] sm:$0xff]  ;;  %v407_v36 = vld [vmem:[%s3170_s10 + $0x620] sm:$0xff] }
  0x47   : > { %404 = vst [vmem:[%s3175_s11 + $0x310] sm:$0xff] %v403_v34  ;;  %v409_v37 = vld [vmem:[%s3170_s10 + $0x628] sm:$0xff]  ;;  %406 = vst [vmem:[%s3175_s11 + $0x318] sm:$0xff] %v405_v35  ;;  %v411_v38 = vld [vmem:[%s3170_s10 + $0x660] sm:$0xff] }
  0x48   : > { %408 = vst [vmem:[%s3175_s11 + $0x320] sm:$0xff] %v407_v36  ;;  %410 = vst [vmem:[%s3175_s11 + $0x328] sm:$0xff] %v409_v37  ;;  %v413_v39 = vld [vmem:[%s3170_s10 + $0x668] sm:$0xff]  ;;  %v415_v40 = vld [vmem:[%s3170_s10 + $0x670] sm:$0xff] }
  0x49   : > { %412 = vst [vmem:[%s3175_s11 + $0x330] sm:$0xff] %v411_v38  ;;  %414 = vst [vmem:[%s3175_s11 + $0x338] sm:$0xff] %v413_v39  ;;  %v417_v41 = vld [vmem:[%s3170_s10 + $0x678] sm:$0xff]  ;;  %v419_v42 = vld [vmem:[%s3170_s10 + $0x680] sm:$0xff] }
  0x4a   : > { %416 = vst [vmem:[%s3175_s11 + $0x340] sm:$0xff] %v415_v40  ;;  %v421_v43 = vld [vmem:[%s3170_s10 + $0x688] sm:$0xff]  ;;  %418 = vst [vmem:[%s3175_s11 + $0x348] sm:$0xff] %v417_v41  ;;  %v423_v44 = vld [vmem:[%s3170_s10 + $0x6c0] sm:$0xff] }
  0x4b   : > { %420 = vst [vmem:[%s3175_s11 + $0x350] sm:$0xff] %v419_v42  ;;  %422 = vst [vmem:[%s3175_s11 + $0x358] sm:$0xff] %v421_v43  ;;  %v425_v45 = vld [vmem:[%s3170_s10 + $0x6c8] sm:$0xff]  ;;  %v427_v46 = vld [vmem:[%s3170_s10 + $0x6d0] sm:$0xff] }
  0x4c   : > { %424 = vst [vmem:[%s3175_s11 + $0x360] sm:$0xff] %v423_v44  ;;  %426 = vst [vmem:[%s3175_s11 + $0x368] sm:$0xff] %v425_v45  ;;  %v429_v47 = vld [vmem:[%s3170_s10 + $0x6d8] sm:$0xff]  ;;  %v431_v48 = vld [vmem:[%s3170_s10 + $0x6e0] sm:$0xff] }
  0x4d   : > { %428 = vst [vmem:[%s3175_s11 + $0x370] sm:$0xff] %v427_v46  ;;  %v433_v49 = vld [vmem:[%s3170_s10 + $0x6e8] sm:$0xff]  ;;  %430 = vst [vmem:[%s3175_s11 + $0x378] sm:$0xff] %v429_v47 }
  0x4e   : > { %432 = vst [vmem:[%s3175_s11 + $0x380] sm:$0xff] %v431_v48  ;;  %434 = vst [vmem:[%s3175_s11 + $0x388] sm:$0xff] %v433_v49 }
  0x4f PF: > { %p2498_p10 = scmp.ge.s32.totalorder %s3081_s21, 1  ;;  %p456_p11 = scmp.lt.s32.totalorder %s3081_s21, 3 }
  0x51   : > { %p457_p12 = pnand %p2498_p10, %p456_p11 }
  0x52   : > { %s3995_s16 = sand.u32 (!%p457_p12), 1, %s3073_s19   ;;  %s2500_s25 = sshll.u32 (!%p457_p12), %s3136_s22, 6 }
  0x53   : > { %460 = sbr.rel (%p457_p12) target bundleno = 985 (0x3d9), region = 59  ;;  %p506_p13 = scmp.lt.s32.totalorder (!%p457_p12), %s2500_s25, 127 }
  0x54   : > { %s2725_s17 = smul.u32 (!%p457_p12), 912, %s3995_s16  ;;  %s2499_s12 = sshll.u32 (!%p457_p12), %s3995_s16, 1 }
  0x55   : > { %s500_s8 = smul.u32 (!%p457_p12), 12, %s3136_s22  ;;  %s2676_s13 = sshll.u32 (!%p457_p12), %s3136_s22, 5 }
  0x56   : > { %s3998_s23 = scalar_lea.vmem (!%p457_p12), [#allocation2], %s2725_s17  ;;  %s498_s14 = scalar_lea.vmem (!%p457_p12), [#allocation3], %s2499_s12 }
  0x57   : > { %p501_p0 = scmp.lt.s32.totalorder (!%p457_p12), %s500_s8, 23  ;;  %s2408_s15 = sshll.u32 (!%p457_p12), %s498_s14, 4  ;;  %s2409_s15 = int_to_ptr.vmem [resolvable:$true] %s2408_s15 }
  0x58   : > { %v545_v50 = vld [vmem:[%s4264_s1 + $0xf8] sm:$0xff]  ;;  %v544_v52 = vld [vmem:[%s4264_s1 + $0xf0] sm:$0xff]  ;;  %v543_v54 = vld [vmem:[%s4264_s1 + $0xe8] sm:$0xff]  ;;  %vm1706_vm0 = vcmask 1043456   ;;  %vm1702_vm1 = vcmask 195584   ;;  %s4276_s25 = smov (!%p506_p13, %s2500_s25), 127 }
  0x59   : > { %v609_v51 = vld [vmem:[%s4264_s1 + $0x2f8] sm:$0xff]  ;;  %739 = vmatprep.subr.mxu0 %v545_v50  ;;  %v608_v53 = vld [vmem:[%s4264_s1 + $0x2f0] sm:$0xff]  ;;  %v607_v55 = vld [vmem:[%s4264_s1 + $0x2e8] sm:$0xff]  ;;  %s2501_s26 = sshll.u32 %s4276_s25, 2  ;;  %s4278_s8 = smov (!%p501_p0, %s500_s8), 23 }
  0x5a   : > { %810 = vmatprep.subr.mxu1 %v609_v51  ;;  %740 = vmatpush1.msra.mxu0 %v544_v52  ;;  %v542_v56 = vld [vmem:[%s4264_s1 + $0xe0] sm:$0xff]  ;;  %v541_v58 = vld [vmem:[%s4264_s1 + $0xd8] sm:$0xff]  ;;  %v540_v60 = vld [vmem:[%s4264_s1 + $0xd0] sm:$0xff]  ;;  %s4151_s7 = scalar_lea.vmem %s4267_s4, %s2501_s26  ;;  %s4178_s11 = scalar_lea.vmem %s4266_s3, %s4278_s8 }
  0x5b   : > { %811 = vmatpush1.msra.mxu1 %v608_v53  ;;  %v606_v57 = vld [vmem:[%s4264_s1 + $0x2e0] sm:$0xff]  ;;  %741 = vmatprep.subr.mxu0 %v543_v54  ;;  %v605_v59 = vld [vmem:[%s4264_s1 + $0x2d8] sm:$0xff]  ;;  %v604_v61 = vld [vmem:[%s4264_s1 + $0x2d0] sm:$0xff]  ;;  %s4226_s25 = scalar_lea.hbm %s4268_s5, %s2676_s13  ;;  %s2395_s26 = scalar_lea.sflag [#allocation4], %s3995_s16 }
  0x5c   : > { %812 = vmatprep.subr.mxu1 %v607_v55  ;;  %742 = vmatpush1.msra.mxu0 %v542_v56  ;;  %v539_v62 = vld [vmem:[%s4264_s1 + $0xc8] sm:$0xff]  ;;  %v538_v0 = vld [vmem:[%s4264_s1 + $0xc0] sm:$0xff]  ;;  %v537_v2 = vld [vmem:[%s4264_s1 + $0xb8] sm:$0xff]  ;;  %s3021_s30 = scalar_lea.vmem %s2409_s15, 32  ;;  %s3084_s22 = smov [#allocation3]  }
  0x5d   : > { %813 = vmatpush1.msra.mxu1 %v606_v57  ;;  %v603_v63 = vld [vmem:[%s4264_s1 + $0x2c8] sm:$0xff]  ;;  %743 = vmatprep.subr.mxu0 %v541_v58  ;;  %v602_v1 = vld [vmem:[%s4264_s1 + $0x2c0] sm:$0xff]  ;;  %v601_v3 = vld [vmem:[%s4264_s1 + $0x2b8] sm:$0xff]  ;;  %p3022_p1 = scmp.ne.s32.totalorder %s2409_s15, %s3021_s30  ;;  %s3025_s6 = sshll.u32 %s3084_s22, 4  ;;  %s3026_s6 = int_to_ptr.vmem [resolvable:$false] %s3025_s6 }
  0x5e   : > { %814 = vmatprep.subr.mxu1 %v605_v59  ;;  %744 = vmatpush1.msra.mxu0 %v540_v60  ;;  %v536_v4 = vld [vmem:[%s4264_s1 + $0xb0] sm:$0xff]  ;;  %v535_v6 = vld [vmem:[%s4264_s1 + $0xa8] sm:$0xff]  ;;  %v534_v8 = vld [vmem:[%s4264_s1 + $0xa0] sm:$0xff]  ;;  %p3028_p4 = scmp.lt.s32.totalorder %s2409_s15, %s3026_s6 }
  0x5f   : > { %815 = vmatpush1.msra.mxu1 %v604_v61  ;;  %745 = vmatprep.subr.mxu0 %v539_v62  ;;  %v600_v5 = vld [vmem:[%s4264_s1 + $0x2b0] sm:$0xff]  ;;  %v599_v7 = vld [vmem:[%s4264_s1 + $0x2a8] sm:$0xff]  ;;  %v598_v9 = vld [vmem:[%s4264_s1 + $0x2a0] sm:$0xff]  ;;  %p3023_p2 = pnand %p3022_p1, %p3154_p6 }
  0x60   : > { %816 = vmatprep.subr.mxu1 %v603_v63  ;;  %746 = vmatpush1.msra.mxu0 %v538_v0  ;;  %v533_v10 = vld [vmem:[%s4264_s1 + $0x98] sm:$0xff]  ;;  %v532_v12 = vld [vmem:[%s4264_s1 + $0x90] sm:$0xff]  ;;  %v531_v14 = vld [vmem:[%s4264_s1 + $0x88] sm:$0xff] }
  0x61   : > { %817 = vmatpush1.msra.mxu1 %v602_v1  ;;  %747 = vmatprep.subr.mxu0 %v537_v2  ;;  %v597_v11 = vld [vmem:[%s4264_s1 + $0x298] sm:$0xff]  ;;  %v596_v13 = vld [vmem:[%s4264_s1 + $0x290] sm:$0xff]  ;;  %v595_v15 = vld [vmem:[%s4264_s1 + $0x288] sm:$0xff]  ;;  %p3024_p3 = pneg %p3023_p2 }
  0x62   : > { %818 = vmatprep.subr.mxu1 %v601_v3  ;;  %748 = vmatpush1.msra.mxu0 %v536_v4  ;;  %v530_v16 = vld [vmem:[%s4264_s1 + $0x80] sm:$0xff]  ;;  %v529_v18 = vld [vmem:[%s4264_s1 + $0x78] sm:$0xff]  ;;  %v528_v20 = vld [vmem:[%s4264_s1 + $0x70] sm:$0xff] }
  0x63   : > { %819 = vmatpush1.msra.mxu1 %v600_v5  ;;  %749 = vmatprep.subr.mxu0 %v535_v6  ;;  %v594_v17 = vld [vmem:[%s4264_s1 + $0x280] sm:$0xff]  ;;  %v593_v19 = vld [vmem:[%s4264_s1 + $0x278] sm:$0xff]  ;;  %v592_v21 = vld [vmem:[%s4264_s1 + $0x270] sm:$0xff] }
  0x64   : > { %820 = vmatprep.subr.mxu1 %v599_v7  ;;  %750 = vmatpush1.msra.mxu0 %v534_v8  ;;  %v527_v22 = vld [vmem:[%s4264_s1 + $0x68] sm:$0xff]  ;;  %v526_v24 = vld [vmem:[%s4264_s1 + $0x60] sm:$0xff]  ;;  %v525_v26 = vld [vmem:[%s4264_s1 + $0x58] sm:$0xff] }
  0x65   : > { %821 = vmatpush1.msra.mxu1 %v598_v9  ;;  %751 = vmatprep.subr.mxu0 %v533_v10  ;;  %v591_v23 = vld [vmem:[%s4264_s1 + $0x268] sm:$0xff]  ;;  %v590_v25 = vld [vmem:[%s4264_s1 + $0x260] sm:$0xff]  ;;  %v589_v27 = vld [vmem:[%s4264_s1 + $0x258] sm:$0xff] }
  0x66   : > { %822 = vmatprep.subr.mxu1 %v597_v11  ;;  %752 = vmatpush1.msra.mxu0 %v532_v12  ;;  %v524_v28 = vld [vmem:[%s4264_s1 + $0x50] sm:$0xff]  ;;  %v523_v30 = vld [vmem:[%s4264_s1 + $0x48] sm:$0xff]  ;;  %v522_v32 = vld [vmem:[%s4264_s1 + $0x40] sm:$0xff] }
  0x67   : > { %823 = vmatpush1.msra.mxu1 %v596_v13  ;;  %753 = vmatprep.subr.mxu0 %v531_v14  ;;  %v588_v29 = vld [vmem:[%s4264_s1 + $0x250] sm:$0xff]  ;;  %v587_v31 = vld [vmem:[%s4264_s1 + $0x248] sm:$0xff]  ;;  %v586_v33 = vld [vmem:[%s4264_s1 + $0x240] sm:$0xff] }
  0x68   : > { %824 = vmatprep.subr.mxu1 %v595_v15  ;;  %754 = vmatpush1.msra.mxu0 %v530_v16  ;;  %v521_v34 = vld [vmem:[%s4264_s1 + $0x38] sm:$0xff]  ;;  %v520_v36 = vld [vmem:[%s4264_s1 + $0x30] sm:$0xff]  ;;  %v519_v38 = vld [vmem:[%s4264_s1 + $0x28] sm:$0xff]  ;;  %v3083_v16 = vmov 1983009808  }
  0x69   : > { %825 = vmatpush1.msra.mxu1 %v594_v17  ;;  %755 = vmatprep.subr.mxu0 %v529_v18  ;;  %v585_v35 = vld [vmem:[%s4264_s1 + $0x238] sm:$0xff]  ;;  %v584_v37 = vld [vmem:[%s4264_s1 + $0x230] sm:$0xff]  ;;  %v583_v39 = vld [vmem:[%s4264_s1 + $0x228] sm:$0xff]  ;;  %v710_v17 = vunpack.c.l.s4 %v3083_v16  ;;  %v712_v18 = vlaneseq }
  0x6a   : > { %826 = vmatprep.subr.mxu1 %v593_v19  ;;  %756 = vmatpush1.msra.mxu0 %v528_v20  ;;  %v518_v40 = vld [vmem:[%s4264_s1 + $0x20] sm:$0xff]  ;;  %v517_v42 = vld [vmem:[%s4264_s1 + $0x18] sm:$0xff]  ;;  %v516_v44 = vld [vmem:[%s4264_s1 + $0x10] sm:$0xff] }
  0x6b   : > { %827 = vmatpush1.msra.mxu1 %v592_v21  ;;  %757 = vmatprep.subr.mxu0 %v527_v22  ;;  %v582_v41 = vld [vmem:[%s4264_s1 + $0x220] sm:$0xff]  ;;  %v581_v43 = vld [vmem:[%s4264_s1 + $0x218] sm:$0xff]  ;;  %v580_v45 = vld [vmem:[%s4264_s1 + $0x210] sm:$0xff] }
  0x6c   : > { %828 = vmatprep.subr.mxu1 %v591_v23  ;;  %758 = vmatpush1.msra.mxu0 %v526_v24  ;;  %v515_v46 = vld [vmem:[%s4264_s1 + $0x8] sm:$0xff]  ;;  %v514_v48 = vld [vmem:[%s4264_s1] sm:$0xff]  ;;  %v577_v50 = vld [vmem:[%s4264_s1 + $0x1f8] sm:$0xff] }
  0x6d   : > { %829 = vmatpush1.msra.mxu1 %v590_v25  ;;  %759 = vmatprep.subr.mxu0 %v525_v26  ;;  %v579_v47 = vld [vmem:[%s4264_s1 + $0x208] sm:$0xff]  ;;  %v578_v49 = vld [vmem:[%s4264_s1 + $0x200] sm:$0xff]  ;;  %v641_v51 = vld [vmem:[%s4264_s1 + $0x3f8] sm:$0xff] }
  0x6e   : > { %830 = vmatprep.subr.mxu1 %v589_v27  ;;  %760 = vmatpush1.msra.mxu0 %v524_v28  ;;  %v576_v52 = vld [vmem:[%s4264_s1 + $0x1f0] sm:$0xff]  ;;  %v575_v54 = vld [vmem:[%s4264_s1 + $0x1e8] sm:$0xff]  ;;  %v574_v56 = vld [vmem:[%s4264_s1 + $0x1e0] sm:$0xff]  ;;  %v711_v27 = vunpack.c.0.s8 %v710_v17  ;;  %v3710_v28 = vshrl.u32 %v712_v18, 7 }
  0x6f   : > { %831 = vmatpush1.msra.mxu1 %v588_v29  ;;  %761 = vmatprep.subr.mxu0 %v523_v30  ;;  %v640_v53 = vld [vmem:[%s4264_s1 + $0x3f0] sm:$0xff]  ;;  %v639_v55 = vld [vmem:[%s4264_s1 + $0x3e8] sm:$0xff]  ;;  %v638_v57 = vld [vmem:[%s4264_s1 + $0x3e0] sm:$0xff] }
  0x70   : > { %832 = vmatprep.subr.mxu1 %v587_v31  ;;  %762 = vmatpush1.msra.mxu0 %v522_v32  ;;  %v573_v58 = vld [vmem:[%s4264_s1 + $0x1d8] sm:$0xff]  ;;  %v572_v60 = vld [vmem:[%s4264_s1 + $0x1d0] sm:$0xff]  ;;  %v571_v62 = vld [vmem:[%s4264_s1 + $0x1c8] sm:$0xff] }
  0x71   : > { %833 = vmatpush1.msra.mxu1 %v586_v33  ;;  %763 = vmatprep.subr.mxu0 %v521_v34  ;;  %v637_v59 = vld [vmem:[%s4264_s1 + $0x3d8] sm:$0xff]  ;;  %v636_v61 = vld [vmem:[%s4264_s1 + $0x3d0] sm:$0xff]  ;;  %v635_v63 = vld [vmem:[%s4264_s1 + $0x3c8] sm:$0xff] }
  0x72   : > { %834 = vmatprep.subr.mxu1 %v585_v35  ;;  %764 = vmatpush1.msra.mxu0 %v520_v36  ;;  %v570_v0 = vld [vmem:[%s4264_s1 + $0x1c0] sm:$0xff]  ;;  %v569_v2 = vld [vmem:[%s4264_s1 + $0x1b8] sm:$0xff]  ;;  %v568_v4 = vld [vmem:[%s4264_s1 + $0x1b0] sm:$0xff] }
  0x73   : > { %835 = vmatpush1.msra.mxu1 %v584_v37  ;;  %765 = vmatprep.subr.mxu0 %v519_v38  ;;  %v634_v1 = vld [vmem:[%s4264_s1 + $0x3c0] sm:$0xff]  ;;  %v633_v3 = vld [vmem:[%s4264_s1 + $0x3b8] sm:$0xff]  ;;  %v632_v5 = vld [vmem:[%s4264_s1 + $0x3b0] sm:$0xff]  ;;  %v714_v38 = vsub.s32 %v711_v27, %v3710_v28 }
  0x74   : > { %836 = vmatprep.subr.mxu1 %v583_v39  ;;  %766 = vmatpush1.msra.mxu0 %v518_v40  ;;  %v567_v6 = vld [vmem:[%s4264_s1 + $0x1a8] sm:$0xff]  ;;  %v566_v8 = vld [vmem:[%s4264_s1 + $0x1a0] sm:$0xff]  ;;  %v565_v10 = vld [vmem:[%s4264_s1 + $0x198] sm:$0xff] }
  0x75   : > { %837 = vmatpush1.msra.mxu1 %v582_v41  ;;  %767 = vmatprep.subr.mxu0 %v517_v42  ;;  %v631_v7 = vld [vmem:[%s4264_s1 + $0x3a8] sm:$0xff]  ;;  %v630_v9 = vld [vmem:[%s4264_s1 + $0x3a0] sm:$0xff]  ;;  %v629_v11 = vld [vmem:[%s4264_s1 + $0x398] sm:$0xff] }
  0x76   : > { %838 = vmatprep.subr.mxu1 %v581_v43  ;;  %768 = vmatpush1.msra.mxu0 %v516_v44  ;;  %v564_v12 = vld [vmem:[%s4264_s1 + $0x190] sm:$0xff]  ;;  %v563_v14 = vld [vmem:[%s4264_s1 + $0x188] sm:$0xff]  ;;  %v562_v19 = vld [vmem:[%s4264_s1 + $0x180] sm:$0xff] }
  0x77   : > { %839 = vmatpush1.msra.mxu1 %v580_v45  ;;  %769 = vmatprep.subr.mxu0 %v515_v46  ;;  %v628_v13 = vld [vmem:[%s4264_s1 + $0x390] sm:$0xff]  ;;  %v627_v15 = vld [vmem:[%s4264_s1 + $0x388] sm:$0xff]  ;;  %v626_v20 = vld [vmem:[%s4264_s1 + $0x380] sm:$0xff] }
  0x78   : > { %840 = vmatprep.subr.mxu1 %v579_v47  ;;  %770 = vmatpush1.msra.mxu0 %v514_v48  ;;  %v561_v21 = vld [vmem:[%s4264_s1 + $0x178] sm:$0xff]  ;;  %v560_v23 = vld [vmem:[%s4264_s1 + $0x170] sm:$0xff]  ;;  %v559_v25 = vld [vmem:[%s4264_s1 + $0x168] sm:$0xff] }
  0x79   : > { %841 = vmatpush1.msra.mxu1 %v578_v49  ;;  %771 = vmatprep.subr.mxu0 %v577_v50  ;;  %v625_v22 = vld [vmem:[%s4264_s1 + $0x378] sm:$0xff]  ;;  %v624_v24 = vld [vmem:[%s4264_s1 + $0x370] sm:$0xff]  ;;  %v623_v26 = vld [vmem:[%s4264_s1 + $0x368] sm:$0xff] }
  0x7a   : > { %842 = vmatprep.subr.mxu1 %v641_v51  ;;  %772 = vmatpush2.msra.mxu0 %v576_v52  ;;  %v558_v29 = vld [vmem:[%s4264_s1 + $0x160] sm:$0xff]  ;;  %v557_v31 = vld [vmem:[%s4264_s1 + $0x158] sm:$0xff]  ;;  %v556_v34 = vld [vmem:[%s4264_s1 + $0x150] sm:$0xff] }
  0x7b   : > { %843 = vmatpush2.msra.mxu1 %v640_v53  ;;  %773 = vmatprep.subr.mxu0 %v575_v54  ;;  %v622_v30 = vld [vmem:[%s4264_s1 + $0x360] sm:$0xff]  ;;  %v621_v32 = vld [vmem:[%s4264_s1 + $0x358] sm:$0xff]  ;;  %v620_v35 = vld [vmem:[%s4264_s1 + $0x350] sm:$0xff] }
  0x7c   : > { %844 = vmatprep.subr.mxu1 %v639_v55  ;;  %774 = vmatpush2.msra.mxu0 %v574_v56  ;;  %v512_v33 = vld [vmem:[%s4263_s0] sm:$0xff]  ;;  %v555_v36 = vld [vmem:[%s4264_s1 + $0x148] sm:$0xff]  ;;  %v553_v42 = vld [vmem:[%s4264_s1 + $0x138] sm:$0xff] }
  0x7d   : > { %845 = vmatpush2.msra.mxu1 %v638_v57  ;;  %775 = vmatprep.subr.mxu0 %v573_v58  ;;  %v619_v37 = vld [vmem:[%s4264_s1 + $0x348] sm:$0xff]  ;;  %v554_v39 = vld [vmem:[%s4264_s1 + $0x140] sm:$0xff]  ;;  %v708_v41 = vcombine.high %v512_v33, %v512_v33  ;;  %v617_v43 = vld [vmem:[%s4264_s1 + $0x338] sm:$0xff]  ;;  %v715_v48 = vrot.slane %v512_v33, %v714_v38 }
  0x7e   : > { %846 = vmatprep.subr.mxu1 %v637_v59  ;;  %776 = vmatpush2.msra.mxu0 %v572_v60  ;;  %v618_v40 = vld [vmem:[%s4264_s1 + $0x340] sm:$0xff]  ;;  %v552_v44 = vld [vmem:[%s4264_s1 + $0x130] sm:$0xff]  ;;  %v551_v46 = vld [vmem:[%s4264_s1 + $0x128] sm:$0xff] }
  0x7f   : > { %847 = vmatpush2.msra.mxu1 %v636_v61  ;;  %777 = vmatprep.subr.mxu0 %v571_v62  ;;  %v616_v45 = vld [vmem:[%s4264_s1 + $0x330] sm:$0xff]  ;;  %v615_v47 = vld [vmem:[%s4264_s1 + $0x328] sm:$0xff]  ;;  %v550_v49 = vld [vmem:[%s4264_s1 + $0x120] sm:$0xff]  ;;  %v722_v51 = vrot.slane %v708_v41, %v714_v38  ;;  %v723_v58 = vcombine.high %v715_v48, %v715_v48 }
  0x80   : > { %848 = vmatprep.subr.mxu1 %v635_v63  ;;  %778 = vmatpush2.msra.mxu0 %v570_v0  ;;  %v614_v50 = vld [vmem:[%s4264_s1 + $0x320] sm:$0xff]  ;;  %v549_v52 = vld [vmem:[%s4264_s1 + $0x118] sm:$0xff]  ;;  %v548_v54 = vld [vmem:[%s4264_s1 + $0x110] sm:$0xff] }
  0x81   : > { %849 = vmatpush2.msra.mxu1 %v634_v1  ;;  %779 = vmatprep.subr.mxu0 %v569_v2  ;;  %v613_v53 = vld [vmem:[%s4264_s1 + $0x318] sm:$0xff]  ;;  %v612_v55 = vld [vmem:[%s4264_s1 + $0x310] sm:$0xff]  ;;  %v547_v56 = vld [vmem:[%s4264_s1 + $0x108] sm:$0xff]  ;;  %v724_v60 = vcombine.high %v722_v51, %v722_v51 }
  0x82   : > { %850 = vmatprep.subr.mxu1 %v633_v3  ;;  %780 = vmatpush2.msra.mxu0 %v568_v4  ;;  %v611_v57 = vld [vmem:[%s4264_s1 + $0x308] sm:$0xff]  ;;  %v546_v59 = vld [vmem:[%s4264_s1 + $0x100] sm:$0xff]  ;;  %v673_v62 = vld [vmem:[%s4264_s1 + $0x4f8] sm:$0xff] }
  0x83   : > { %851 = vmatpush2.msra.mxu1 %v632_v5  ;;  %781 = vmatprep.subr.mxu0 %v567_v6  ;;  %v610_v61 = vld [vmem:[%s4264_s1 + $0x300] sm:$0xff]  ;;  %v3800_v63 = vld.sshfl [vmem:[%s4263_s0 + $0x8] sm:$0x33 pattern:$0x76325410]  ;;  %v672_v0 = vld [vmem:[%s4264_s1 + $0x4f0] sm:$0xff] }
  0x84   : > { %852 = vmatprep.subr.mxu1 %v631_v7  ;;  %782 = vmatpush2.msra.mxu0 %v566_v8  ;;  %v732_v1 = vcombine.high %v3800_v63, %v3800_v63  ;;  %v671_v2 = vld [vmem:[%s4264_s1 + $0x4e8] sm:$0xff]  ;;  %v670_v3 = vld [vmem:[%s4264_s1 + $0x4e0] sm:$0xff]  ;;  %v669_v4 = vld [vmem:[%s4264_s1 + $0x4d8] sm:$0xff] }
  0x85   : > { %853 = vmatpush2.msra.mxu1 %v630_v9  ;;  %783 = vmatprep.subr.mxu0 %v565_v10  ;;  %v668_v5 = vld [vmem:[%s4264_s1 + $0x4d0] sm:$0xff]  ;;  %v667_v6 = vld [vmem:[%s4264_s1 + $0x4c8] sm:$0xff]  ;;  %v666_v7 = vld [vmem:[%s4264_s1 + $0x4c0] sm:$0xff] }
  0x86   : > { %854 = vmatprep.subr.mxu1 %v629_v11  ;;  %784 = vmatpush2.msra.mxu0 %v564_v12  ;;  %v665_v8 = vld [vmem:[%s4264_s1 + $0x4b8] sm:$0xff]  ;;  %v664_v9 = vld [vmem:[%s4264_s1 + $0x4b0] sm:$0xff]  ;;  %v663_v10 = vld [vmem:[%s4264_s1 + $0x4a8] sm:$0xff] }
  0x87   : > { %855 = vmatpush2.msra.mxu1 %v628_v13  ;;  %785 = vmatprep.subr.mxu0 %v563_v14  ;;  %v662_v11 = vld [vmem:[%s4264_s1 + $0x4a0] sm:$0xff]  ;;  %v661_v12 = vld [vmem:[%s4264_s1 + $0x498] sm:$0xff]  ;;  %v660_v13 = vld [vmem:[%s4264_s1 + $0x490] sm:$0xff] }
  0x88   : > { %856 = vmatprep.subr.mxu1 %v627_v15  ;;  %786 = vmatpush2.msra.mxu0 %v562_v19  ;;  %v659_v14 = vld [vmem:[%s4264_s1 + $0x488] sm:$0xff]  ;;  %v658_v15 = vld [vmem:[%s4264_s1 + $0x480] sm:$0xff]  ;;  %v657_v16 = vld [vmem:[%s4264_s1 + $0x478] sm:$0xff] }
  0x89   : > { %857 = vmatpush2.msra.mxu1 %v626_v20  ;;  %787 = vmatprep.subr.mxu0 %v561_v21  ;;  %v656_v17 = vld [vmem:[%s4264_s1 + $0x470] sm:$0xff]  ;;  %v655_v18 = vld [vmem:[%s4264_s1 + $0x468] sm:$0xff]  ;;  %v654_v19 = vld [vmem:[%s4264_s1 + $0x460] sm:$0xff] }
  0x8a   : > { %858 = vmatprep.subr.mxu1 %v625_v22  ;;  %788 = vmatpush2.msra.mxu0 %v560_v23  ;;  %v653_v20 = vld [vmem:[%s4264_s1 + $0x458] sm:$0xff]  ;;  %v652_v21 = vld [vmem:[%s4264_s1 + $0x450] sm:$0xff]  ;;  %v651_v22 = vld [vmem:[%s4264_s1 + $0x448] sm:$0xff] }
  0x8b   : > { %859 = vmatpush2.msra.mxu1 %v624_v24  ;;  %789 = vmatprep.subr.mxu0 %v559_v25  ;;  %v650_v23 = vld [vmem:[%s4264_s1 + $0x440] sm:$0xff]  ;;  %v649_v24 = vld [vmem:[%s4264_s1 + $0x438] sm:$0xff]  ;;  %v648_v25 = vld [vmem:[%s4264_s1 + $0x430] sm:$0xff] }
  0x8c   : > { %860 = vmatprep.subr.mxu1 %v623_v26  ;;  %790 = vmatpush2.msra.mxu0 %v558_v29  ;;  %v647_v26 = vld [vmem:[%s4264_s1 + $0x428] sm:$0xff]  ;;  %v646_v27 = vld [vmem:[%s4264_s1 + $0x420] sm:$0xff]  ;;  %v645_v29 = vld [vmem:[%s4264_s1 + $0x418] sm:$0xff] }
  0x8d   : > { %861 = vmatpush2.msra.mxu1 %v622_v30  ;;  %791 = vmatprep.subr.mxu0 %v557_v31  ;;  %v644_v30 = vld [vmem:[%s4264_s1 + $0x410] sm:$0xff]  ;;  %v643_v31 = vld [vmem:[%s4264_s1 + $0x408] sm:$0xff]  ;;  %v705_v33 = vld [vmem:[%s4264_s1 + $0x5f8] sm:$0xff] }
  0x8e   : > { %862 = vmatprep.subr.mxu1 %v621_v32  ;;  %792 = vmatpush2.msra.mxu0 %v556_v34  ;;  %v642_v32 = vld [vmem:[%s4264_s1 + $0x400] sm:$0xff]  ;;  %v704_v34 = vld [vmem:[%s4264_s1 + $0x5f0] sm:$0xff]  ;;  %v697_v41 = vld [vmem:[%s4264_s1 + $0x5b8] sm:$0xff] }
  0x8f   : > { %863 = vmatpush2.msra.mxu1 %v620_v35  ;;  %793 = vmatprep.subr.mxu0 %v555_v36  ;;  %v703_v35 = vld [vmem:[%s4264_s1 + $0x5e8] sm:$0xff]  ;;  %v702_v36 = vld [vmem:[%s4264_s1 + $0x5e0] sm:$0xff]  ;;  %v700_v38 = vld [vmem:[%s4264_s1 + $0x5d0] sm:$0xff] }
  0x90   : > { %864 = vmatprep.subr.mxu1 %v619_v37  ;;  %794 = vmatpush2.msra.mxu0 %v554_v39  ;;  %v701_v37 = vld [vmem:[%s4264_s1 + $0x5d8] sm:$0xff]  ;;  %v699_v39 = vld [vmem:[%s4264_s1 + $0x5c8] sm:$0xff] }
  0x91   : > { %865 = vmatpush2.msra.mxu1 %v618_v40  ;;  %795 = vmatprep.subr.mxu0 %v553_v42  ;;  %v698_v40 = vld [vmem:[%s4264_s1 + $0x5c0] sm:$0xff]  ;;  %v696_v42 = vld [vmem:[%s4264_s1 + $0x5b0] sm:$0xff] }
  0x92   : > { %866 = vmatprep.subr.mxu1 %v617_v43  ;;  %796 = vmatpush2.msra.mxu0 %v552_v44  ;;  %v695_v43 = vld [vmem:[%s4264_s1 + $0x5a8] sm:$0xff]  ;;  %v694_v44 = vld [vmem:[%s4264_s1 + $0x5a0] sm:$0xff] }
  0x93   : > { %867 = vmatpush2.msra.mxu1 %v616_v45  ;;  %797 = vmatprep.subr.mxu0 %v551_v46  ;;  %v693_v45 = vld [vmem:[%s4264_s1 + $0x598] sm:$0xff]  ;;  %v692_v46 = vld [vmem:[%s4264_s1 + $0x590] sm:$0xff] }
  0x94   : > { %868 = vmatprep.subr.mxu1 %v615_v47  ;;  %798 = vmatpush2.msra.mxu0 %v550_v49  ;;  %v691_v47 = vld [vmem:[%s4264_s1 + $0x588] sm:$0xff]  ;;  %v689_v49 = vld [vmem:[%s4264_s1 + $0x578] sm:$0xff] }
  0x95   : > { %869 = vmatpush2.msra.mxu1 %v614_v50  ;;  %799 = vmatprep.subr.mxu0 %v549_v52  ;;  %v688_v50 = vld [vmem:[%s4264_s1 + $0x570] sm:$0xff]  ;;  %v686_v52 = vld [vmem:[%s4264_s1 + $0x560] sm:$0xff] }
  0x96   : > { %870 = vmatprep.subr.mxu1 %v613_v53  ;;  %800 = vmatpush2.msra.mxu0 %v548_v54  ;;  %v685_v53 = vld [vmem:[%s4264_s1 + $0x558] sm:$0xff]  ;;  %v684_v54 = vld [vmem:[%s4264_s1 + $0x550] sm:$0xff] }
  0x97   : > { %871 = vmatpush2.msra.mxu1 %v612_v55  ;;  %801 = vmatprep.subr.mxu0 %v547_v56  ;;  %v683_v55 = vld [vmem:[%s4264_s1 + $0x548] sm:$0xff]  ;;  %v682_v56 = vld [vmem:[%s4264_s1 + $0x540] sm:$0xff] }
  0x98   : > { %872 = vmatprep.subr.mxu1 %v611_v57  ;;  %802 = vmatpush2.msra.mxu0 %v546_v59  ;;  %v681_v57 = vld [vmem:[%s4264_s1 + $0x538] sm:$0xff]  ;;  %v679_v59 = vld [vmem:[%s4264_s1 + $0x528] sm:$0xff] }
  0x99   : > { %803 = vmatprep.mubr.f32.mxu0 %v723_v58  ;;  %873 = vmatpush2.msra.mxu1 %v610_v61  ;;  %v680_v58 = vld [vmem:[%s4264_s1 + $0x530] sm:$0xff]  ;;  %v677_v61 = vld [vmem:[%s4264_s1 + $0x518] sm:$0xff] }
  0x9a   : > { %874 = vmatprep.mubr.f32.mxu1 %v724_v60  ;;  %804 = vmatmul.mubr.f32.vlgmr.msra.gmra.mxu0 %v715_v48  ;;  %v690_v48 = vld [vmem:[%s4264_s1 + $0x580] sm:$0xff] }
  0x9b   : > { %875 = vmatmul.mubr.f32.vlgmr.msra.gmra.mxu1 %v722_v51  ;;  %881 = vmatprep.subr.mxu0 %v673_v62  ;;  %v687_v51 = vld [vmem:[%s4264_s1 + $0x568] sm:$0xff]  ;;  %v678_v60 = vld [vmem:[%s4264_s1 + $0x520] sm:$0xff]  ;;  %v676_v62 = vld [vmem:[%s4264_s1 + $0x510] sm:$0xff] }
  0x9c   : > { %945 = vmatprep.mubr.f32.mxu0 %v732_v1  ;;  %882 = vmatpush1.msra.mxu0 %v672_v0  ;;  %v675_v0 = vld [vmem:[%s4264_s1 + $0x508] sm:$0xff]  ;;  %v674_v1 = vld [vmem:[%s4264_s1 + $0x500] sm:$0xff] }
  0x9d   : > { %883 = vmatprep.subr.mxu0 %v671_v2  ;;  %v2767_v2 = vld [vmem:[%s3998_s23 + $0x2a0] ss:$48 sps:$4 sm:$0xff]  }
  0x9e   : > { %884 = vmatpush1.msra.mxu0 %v670_v3  ;;  %v2769_v3 = vld [vmem:[%s3998_s23 + $0x2a4] ss:$48 sps:$4 sm:$0xff]  }
  0x9f   : > { %885 = vmatprep.subr.mxu0 %v669_v4  ;;  %v2772_v4 = vld [vmem:[%s3998_s23 + $0x2b4] ss:$48 sps:$4 sm:$0xff]   ;;  %1743 = vmatprep.subr.bf16.mxu1 %v2769_v3  ;;  %v2839_v3 = vld [vmem:[%s3998_s23 + $0x1ec] ss:$48 sps:$4 sm:$0xff]  }
  0xa0   : > { %886 = vmatpush1.msra.mxu0 %v668_v5  ;;  %v2773_v5 = vld [vmem:[%s3998_s23 + $0x240] ss:$48 sps:$4 sm:$0xff]   ;;  %1744 = vmatpush1.bf16.msra.mxu1 %v2767_v2 }
  0xa1   : > { %887 = vmatprep.subr.mxu0 %v667_v6  ;;  %v2775_v6 = vld [vmem:[%s3998_s23 + $0x244] ss:$48 sps:$4 sm:$0xff]   ;;  %v2834_v2 = vld [vmem:[%s3998_s23 + $0x260] ss:$48 sps:$4 sm:$0xff]  }
  0xa2   : > { %888 = vmatpush1.msra.mxu0 %v666_v7  ;;  %v2776_v7 = vld [vmem:[%s3998_s23 + $0x250] ss:$48 sps:$4 sm:$0xff]   ;;  %1745 = vmatprep.subr.bf16.mxu1 %v2775_v6  ;;  %v2845_v6 = vld [vmem:[%s3998_s23 + $0x18c] ss:$48 sps:$4 sm:$0xff]  }
  0xa3   : > { %889 = vmatprep.subr.mxu0 %v665_v8  ;;  %v2778_v8 = vld [vmem:[%s3998_s23 + $0x254] ss:$48 sps:$4 sm:$0xff]  }
  0xa4   : > { %890 = vmatpush1.msra.mxu0 %v664_v9  ;;  %v2781_v9 = vld [vmem:[%s3998_s23 + $0x1e4] ss:$48 sps:$4 sm:$0xff]   ;;  %1746 = vmatpush1.bf16.msra.mxu1 %v2773_v5  ;;  %v2840_v5 = vld [vmem:[%s3998_s23 + $0x200] ss:$48 sps:$4 sm:$0xff]  }
  0xa5   : > { %891 = vmatprep.subr.mxu0 %v663_v10  ;;  %v2779_v10 = vld [vmem:[%s3998_s23 + $0x1e0] ss:$48 sps:$4 sm:$0xff]   ;;  %1747 = vmatprep.subr.bf16.mxu1 %v2781_v9 }
  0xa6   : > { %892 = vmatpush1.msra.mxu0 %v662_v11  ;;  %v2784_v11 = vld [vmem:[%s3998_s23 + $0x1f4] ss:$48 sps:$4 sm:$0xff]   ;;  %v2846_v9 = vld [vmem:[%s3998_s23 + $0x1a0] ss:$48 sps:$4 sm:$0xff]  }
  0xa7   : > { %893 = vmatprep.subr.mxu0 %v661_v12  ;;  %v2782_v12 = vld [vmem:[%s3998_s23 + $0x1f0] ss:$48 sps:$4 sm:$0xff]  }
  0xa8   : > { %894 = vmatpush1.msra.mxu0 %v660_v13  ;;  %v2787_v13 = vld [vmem:[%s3998_s23 + $0x184] ss:$48 sps:$4 sm:$0xff]   ;;  %1748 = vmatpush1.bf16.msra.mxu1 %v2779_v10  ;;  %v2851_v10 = vld [vmem:[%s3998_s23 + $0x12c] ss:$48 sps:$4 sm:$0xff]  }
  0xa9   : > { %895 = vmatprep.subr.mxu0 %v659_v14  ;;  %v2790_v14 = vld [vmem:[%s3998_s23 + $0x194] ss:$48 sps:$4 sm:$0xff]   ;;  %1749 = vmatprep.subr.bf16.mxu1 %v2787_v13  ;;  %v2852_v13 = vld [vmem:[%s3998_s23 + $0x140] ss:$48 sps:$4 sm:$0xff]  }
  0xaa   : > { %896 = vmatpush1.msra.mxu0 %v658_v15  ;;  %v2785_v15 = vld [vmem:[%s3998_s23 + $0x180] ss:$48 sps:$4 sm:$0xff]  }
  0xab   : > { %897 = vmatprep.subr.mxu0 %v657_v16  ;;  %v2788_v16 = vld [vmem:[%s3998_s23 + $0x190] ss:$48 sps:$4 sm:$0xff]  }
  0xac   : > { %898 = vmatpush1.msra.mxu0 %v656_v17  ;;  %v2793_v17 = vld [vmem:[%s3998_s23 + $0x124] ss:$48 sps:$4 sm:$0xff]   ;;  %1750 = vmatpush1.bf16.msra.mxu1 %v2785_v15 }
  0xad   : > { %899 = vmatprep.subr.mxu0 %v655_v18  ;;  %v2796_v18 = vld [vmem:[%s3998_s23 + $0x134] ss:$48 sps:$4 sm:$0xff]   ;;  %1751 = vmatprep.subr.bf16.mxu1 %v2793_v17  ;;  %v2858_v17 = vld [vmem:[%s3998_s23 + $0xe0] ss:$48 sps:$4 sm:$0xff]  }
  0xae   : > { %900 = vmatpush1.msra.mxu0 %v654_v19  ;;  %v2791_v19 = vld [vmem:[%s3998_s23 + $0x120] ss:$48 sps:$4 sm:$0xff]   ;;  %v2860_v15 = vld [vmem:[%s3998_s23 + $0xe4] ss:$48 sps:$4 sm:$0xff]  }
  0xaf   : > { %901 = vmatprep.subr.mxu0 %v653_v20  ;;  %v2794_v20 = vld [vmem:[%s3998_s23 + $0x130] ss:$48 sps:$4 sm:$0xff]  }
  0xb0   : > { %902 = vmatpush1.msra.mxu0 %v652_v21  ;;  %v2799_v21 = vld [vmem:[%s3998_s23 + $0xc4] ss:$48 sps:$4 sm:$0xff]   ;;  %1752 = vmatpush1.bf16.msra.mxu1 %v2791_v19 }
  0xb1   : > { %903 = vmatprep.subr.mxu0 %v651_v22  ;;  %v2802_v22 = vld [vmem:[%s3998_s23 + $0xd4] ss:$48 sps:$4 sm:$0xff]   ;;  %1753 = vmatprep.subr.bf16.mxu1 %v2799_v21  ;;  %v2864_v21 = vld [vmem:[%s3998_s23 + $0x80] ss:$48 sps:$4 sm:$0xff]  }
  0xb2   : > { %904 = vmatpush1.msra.mxu0 %v650_v23  ;;  %v2797_v23 = vld [vmem:[%s3998_s23 + $0xc0] ss:$48 sps:$4 sm:$0xff]   ;;  %v2866_v19 = vld [vmem:[%s3998_s23 + $0x84] ss:$48 sps:$4 sm:$0xff]  }
  0xb3   : > { %905 = vmatprep.subr.mxu0 %v649_v24  ;;  %v2800_v24 = vld [vmem:[%s3998_s23 + $0xd0] ss:$48 sps:$4 sm:$0xff]  }
  0xb4   : > { %906 = vmatpush1.msra.mxu0 %v648_v25  ;;  %v2805_v25 = vld [vmem:[%s3998_s23 + $0x64] ss:$48 sps:$4 sm:$0xff]   ;;  %1754 = vmatpush1.bf16.msra.mxu1 %v2797_v23 }
  0xb5   : > { %907 = vmatprep.subr.mxu0 %v647_v26  ;;  %v2808_v26 = vld [vmem:[%s3998_s23 + $0x74] ss:$48 sps:$4 sm:$0xff]   ;;  %1755 = vmatprep.subr.bf16.mxu1 %v2805_v25 }
  0xb6   : > { %908 = vmatpush1.msra.mxu0 %v646_v27  ;;  %v2803_v27 = vld [vmem:[%s3998_s23 + $0x60] ss:$48 sps:$4 sm:$0xff]   ;;  %v2872_v23 = vld [vmem:[%s3998_s23 + $0x24] ss:$48 sps:$4 sm:$0xff]  }
  0xb7   : > { %909 = vmatprep.subr.mxu0 %v645_v29  ;;  %v2806_v29 = vld [vmem:[%s3998_s23 + $0x70] ss:$48 sps:$4 sm:$0xff]  }
  0xb8   : > { %910 = vmatpush1.msra.mxu0 %v644_v30  ;;  %v2811_v30 = vld [vmem:[%s3998_s23 + $0x4] ss:$48 sps:$4 sm:$0xff]   ;;  %1756 = vmatpush1.bf16.msra.mxu1 %v2803_v27  ;;  %v2870_v27 = vld [vmem:[%s3998_s23 + $0x20] ss:$48 sps:$4 sm:$0xff]  }
  0xb9   : > { %911 = vmatprep.subr.mxu0 %v643_v31  ;;  %v2814_v31 = vld [vmem:[%s3998_s23 + $0x14] ss:$48 sps:$4 sm:$0xff]   ;;  %1757 = vmatprep.subr.bf16.mxu1 %v2811_v30 }
  0xba   : > { %912 = vmatpush1.msra.mxu0 %v642_v32  ;;  %v1062_v32 = vld [vmem:[%s3998_s23 + $0x360] sm:$0xff] }
  0xbb   : > { %913 = vmatprep.subr.mxu0 %v705_v33  ;;  %v1064_v33 = vld [vmem:[%s3998_s23 + $0x370] sm:$0xff]  ;;  %v1066_v25 = vld [vmem:[%s3998_s23 + $0x380] sm:$0xff] }
  0xbc   : > { %914 = vmatpush2.msra.mxu0 %v704_v34  ;;  %v2809_v34 = vld [vmem:[%s3998_s23] ss:$48 sps:$4 sm:$0xff]   ;;  %v2620_v30 = vcombine.high %v1066_v25, %v1066_v25 }
  0xbd   : > { %915 = vmatprep.subr.mxu0 %v703_v35  ;;  %v2812_v35 = vld [vmem:[%s3998_s23 + $0x10] ss:$48 sps:$4 sm:$0xff]   ;;  %1758 = vmatpush1.bf16.msra.mxu1 %v2809_v34 }
  0xbe   : > { %916 = vmatpush2.msra.mxu0 %v702_v36  ;;  %v2612_v36 = vcombine.high %v1062_v32, %v1062_v32 }
  0xbf   : > { %917 = vmatprep.subr.mxu0 %v701_v37  ;;  %v2616_v37 = vcombine.high %v1064_v33, %v1064_v33 }
  0xc0   : > { %918 = vmatpush2.msra.mxu0 %v700_v38  ;;  %2623 = vmatprep.subr.msk.bf16.mxu1 %vm1706_vm0, %v2612_v36  ;;  %v2611_v38 = vcombine.low %v1062_v32, %v1062_v32  ;;  %v2619_v32 = vcombine.low %v1066_v25, %v1066_v25  ;;  %v2882_v36 = vld [vmem:[%s3998_s23 + $0x324] ss:$48 sps:$4 sm:$0xff]   ;;  %v2946_v25 = vld [vmem:[%s4151_s7 + $0x28] sm:$0xff]  }
  0xc1   : > { %919 = vmatprep.subr.mxu0 %v699_v39  ;;  %v2615_v39 = vcombine.low %v1064_v33, %v1064_v33 }
  0xc2   : > { %920 = vmatpush2.msra.mxu0 %v698_v40  ;;  %v1708_v40 = vsel %vm1706_vm0, %v2611_v38, 0  ;;  %v1732_v34 = vsel %vm1706_vm0, %v2619_v32, 0  ;;  %v2880_v38 = vld [vmem:[%s3998_s23 + $0x320] ss:$48 sps:$4 sm:$0xff]  }
  0xc3   : > { %921 = vmatprep.subr.mxu0 %v697_v41  ;;  %v1720_v41 = vsel %vm1706_vm0, %v2615_v39, 0  ;;  %1772 = vmatpush2.bf16.msra.mxu1 %v1708_v40  ;;  %v2885_v39 = vld [vmem:[%s3998_s23 + $0x2bc] ss:$48 sps:$4 sm:$0xff]   ;;  %v2883_v40 = vld [vmem:[%s3998_s23 + $0x2b8] ss:$48 sps:$4 sm:$0xff]   ;;  %v2952_v32 = vld [vmem:[%s4151_s7 + $0x10] sm:$0xff]  }
  0xc4   : > { %922 = vmatpush2.msra.mxu0 %v696_v42  ;;  %v2821_v42 = vld [vmem:[%s3998_s23 + $0x304] ss:$48 sps:$4 sm:$0xff]  }
  0xc5   : > { %923 = vmatprep.subr.mxu0 %v695_v43  ;;  %v2824_v43 = vld [vmem:[%s3998_s23 + $0x314] ss:$48 sps:$4 sm:$0xff]   ;;  %1773 = vmatprep.subr.bf16.mxu1 %v2821_v42  ;;  %v2886_v42 = vld [vmem:[%s3998_s23 + $0x258] ss:$48 sps:$4 sm:$0xff]  }
  0xc6   : > { %924 = vmatpush2.msra.mxu0 %v694_v44  ;;  %v2819_v44 = vld [vmem:[%s3998_s23 + $0x300] ss:$48 sps:$4 sm:$0xff]  }
  0xc7   : > { %925 = vmatprep.subr.mxu0 %v693_v45  ;;  %v2822_v45 = vld [vmem:[%s3998_s23 + $0x310] ss:$48 sps:$4 sm:$0xff]   ;;  %1774 = vmatpush2.bf16.msra.mxu1 %v2819_v44  ;;  %v2889_v44 = vld [vmem:[%s3998_s23 + $0x1f8] ss:$48 sps:$4 sm:$0xff]  }
  0xc8   : > { %926 = vmatpush2.msra.mxu0 %v692_v46  ;;  %v2827_v46 = vld [vmem:[%s3998_s23 + $0x2ac] ss:$48 sps:$4 sm:$0xff]  }
  0xc9   : > { %927 = vmatprep.subr.mxu0 %v691_v47  ;;  %v2830_v47 = vld [vmem:[%s3998_s23 + $0x2c4] ss:$48 sps:$4 sm:$0xff]   ;;  %1784 = vmatprep.subr.bf16.mxu1 %v2827_v46  ;;  %v2892_v46 = vld [vmem:[%s3998_s23 + $0x198] ss:$48 sps:$4 sm:$0xff]  }
  0xca   : > { %928 = vmatpush2.msra.mxu0 %v690_v48 }
  0xcb   : > { %929 = vmatprep.subr.mxu0 %v689_v49 }
  0xcc   : > { %930 = vmatpush2.msra.mxu0 %v688_v50 }
  0xcd   : > { %931 = vmatprep.subr.mxu0 %v687_v51 }
  0xce   : > { %932 = vmatpush2.msra.mxu0 %v686_v52 }
  0xcf   : > { %933 = vmatprep.subr.mxu0 %v685_v53 }
  0xd0   : > { %934 = vmatpush2.msra.mxu0 %v684_v54 }
  0xd1   : > { %935 = vmatprep.subr.mxu0 %v683_v55 }
  0xd2   : > { %936 = vmatpush2.msra.mxu0 %v682_v56 }
  0xd3   : > { %937 = vmatprep.subr.mxu0 %v681_v57 }
  0xd4   : > { %938 = vmatpush2.msra.mxu0 %v680_v58 }
  0xd5   : > { %939 = vmatprep.subr.mxu0 %v679_v59  ;;  %v2825_v59 = vld [vmem:[%s3998_s23 + $0x2a8] ss:$48 sps:$4 sm:$0xff]  }
  0xd6   : > { %940 = vmatpush2.msra.mxu0 %v678_v60  ;;  %v2828_v60 = vld [vmem:[%s3998_s23 + $0x2c0] ss:$48 sps:$4 sm:$0xff]  }
  0xd7   : > { %941 = vmatprep.subr.mxu0 %v677_v61 }
  0xd8   : > { %942 = vmatpush2.msra.mxu0 %v676_v62  ;;  %v2833_v62 = vld [vmem:[%s3998_s23 + $0x24c] ss:$48 sps:$4 sm:$0xff]  }
  0xd9   : > { %943 = vmatprep.subr.mxu0 %v675_v0  ;;  %v2836_v0 = vld [vmem:[%s3998_s23 + $0x264] ss:$48 sps:$4 sm:$0xff]  }
  0xda   : > { %944 = vmatpush2.msra.mxu0 %v674_v1  ;;  %v2831_v1 = vld [vmem:[%s3998_s23 + $0x248] ss:$48 sps:$4 sm:$0xff]  }
  0xdb   : > { %946 = vmatmul.mubr.f32.vlgmr.msra.gmra.mxu0 %v3800_v63  ;;  %v2770_v63 = vld [vmem:[%s3998_s23 + $0x2b0] ss:$48 sps:$4 sm:$0xff]   ;;  %1825 = vmatprep.subr.bf16.mxu0 %v2772_v4  ;;  %v2837_v4 = vld [vmem:[%s3998_s23 + $0x1e8] ss:$48 sps:$4 sm:$0xff]  }
  0xdc   : > { %1826 = vmatpush1.bf16.msra.mxu0 %v2770_v63  ;;  %v2842_v63 = vld [vmem:[%s3998_s23 + $0x204] ss:$48 sps:$4 sm:$0xff]  }
  0xdd   : > { %1827 = vmatprep.subr.bf16.mxu0 %v2778_v8  ;;  %v2843_v8 = vld [vmem:[%s3998_s23 + $0x188] ss:$48 sps:$4 sm:$0xff]  }
  0xe0   : > { %1828 = vmatpush1.bf16.msra.mxu0 %v2776_v7  ;;  %v2848_v7 = vld [vmem:[%s3998_s23 + $0x1a4] ss:$48 sps:$4 sm:$0xff]  }
  0xe1   : > { %1829 = vmatprep.subr.bf16.mxu0 %v2784_v11  ;;  %v2854_v11 = vld [vmem:[%s3998_s23 + $0x144] ss:$48 sps:$4 sm:$0xff]  }
  0xe4   : > { %1830 = vmatpush1.bf16.msra.mxu0 %v2782_v12  ;;  %v2849_v12 = vld [vmem:[%s3998_s23 + $0x128] ss:$48 sps:$4 sm:$0xff]  }
  0xe5   : > { %1831 = vmatprep.subr.bf16.mxu0 %v2790_v14  ;;  %v2857_v14 = vld [vmem:[%s3998_s23 + $0xcc] ss:$48 sps:$4 sm:$0xff]  }
  0xe8   : > { %1832 = vmatpush1.bf16.msra.mxu0 %v2788_v16  ;;  %v2855_v16 = vld [vmem:[%s3998_s23 + $0xc8] ss:$48 sps:$4 sm:$0xff]  }
  0xe9   : > { %1833 = vmatprep.subr.bf16.mxu0 %v2796_v18  ;;  %v2863_v18 = vld [vmem:[%s3998_s23 + $0x6c] ss:$48 sps:$4 sm:$0xff]  }
  0xec   : > { %1834 = vmatpush1.bf16.msra.mxu0 %v2794_v20  ;;  %v2861_v20 = vld [vmem:[%s3998_s23 + $0x68] ss:$48 sps:$4 sm:$0xff]  }
  0xed   : > { %1835 = vmatprep.subr.bf16.mxu0 %v2802_v22  ;;  %v2869_v22 = vld [vmem:[%s3998_s23 + $0xc] ss:$48 sps:$4 sm:$0xff]  }
  0xf0   : > { %1836 = vmatpush1.bf16.msra.mxu0 %v2800_v24  ;;  %v1063_v24 = vld [vmem:[%s3998_s23 + $0x368] sm:$0xff] }
  0xf1   : > { %1837 = vmatprep.subr.bf16.mxu0 %v2808_v26  ;;  %v2867_v26 = vld [vmem:[%s3998_s23 + $0x8] ss:$48 sps:$4 sm:$0xff]  }
  0xf4   : > { %1838 = vmatpush1.bf16.msra.mxu0 %v2806_v29  ;;  %v2614_v29 = vcombine.high %v1063_v24, %v1063_v24 }
  0xf5   : > { %1839 = vmatprep.subr.bf16.mxu0 %v2814_v31  ;;  %v2613_v31 = vcombine.low %v1063_v24, %v1063_v24  ;;  %v2945_v24 = vld [vmem:[%s4151_s7 + $0x68] sm:$0xff]  }
  0xf7   : > { %v1714_v33 = vsel %vm1706_vm0, %v2613_v31, 0  ;;  %v2951_v31 = vld [vmem:[%s4151_s7 + $0x50] sm:$0xff]  }
  0xf8   : > { %1840 = vmatpush1.bf16.msra.mxu0 %v2812_v35  ;;  %v2879_v35 = vld [vmem:[%s3998_s23 + $0x30c] ss:$48 sps:$4 sm:$0xff]  }
  0xf9   : > { %2627 = vmatprep.subr.msk.bf16.mxu0 %vm1706_vm0, %v2616_v37  ;;  %v2877_v37 = vld [vmem:[%s3998_s23 + $0x308] ss:$48 sps:$4 sm:$0xff]  }
  0xfc   : > { %1854 = vmatpush2.bf16.msra.mxu0 %v1720_v41  ;;  %v2888_v41 = vld [vmem:[%s3998_s23 + $0x25c] ss:$48 sps:$4 sm:$0xff]  }
  0xfd   : > { %1855 = vmatprep.subr.bf16.mxu0 %v2824_v43  ;;  %v2891_v43 = vld [vmem:[%s3998_s23 + $0x1fc] ss:$48 sps:$4 sm:$0xff]  }
 0x100   : > { %1856 = vmatpush2.bf16.msra.mxu0 %v2822_v45  ;;  %v2894_v45 = vld [vmem:[%s3998_s23 + $0x19c] ss:$48 sps:$4 sm:$0xff]  }
 0x101   : > { %1907 = vmatprep.subr.bf16.mxu0 %v2830_v47  ;;  %v2897_v47 = vld [vmem:[%s3998_s23 + $0x13c] ss:$48 sps:$4 sm:$0xff]  }
 0x15a   : > { %v805_v48 = vpop.f32.mrf.mxu0 }
 0x15b   : > { %v876_v49 = vpop.f32.mrf.mxu1 }
 0x15c   : > { %v807_v50 = vpop.f32.mrf.mxu0  ;;  %v877_v52 = vadd.f32 %v876_v49, %v805_v48  ;;  %v2895_v48 = vld [vmem:[%s3998_s23 + $0x138] ss:$48 sps:$4 sm:$0xff]   ;;  %v2900_v49 = vld [vmem:[%s3998_s23 + $0xdc] ss:$48 sps:$4 sm:$0xff]  }
 0x15d   : > { %v878_v51 = vpop.f32.mrf.mxu1 }
 0x15e   : > { %v879_v54 = vadd.f32 %v878_v51, %v807_v50  ;;  %v2898_v50 = vld [vmem:[%s3998_s23 + $0xd8] ss:$48 sps:$4 sm:$0xff]   ;;  %v2903_v51 = vld [vmem:[%s3998_s23 + $0x7c] ss:$48 sps:$4 sm:$0xff]  }
 0x19b   : > { %v947_v53 = vpop.f32.mrf.mxu0 }
 0x19c   : > { %v948_v55 = vadd.f32 %v947_v53, %v877_v52  ;;  %v2901_v52 = vld [vmem:[%s3998_s23 + $0x78] ss:$48 sps:$4 sm:$0xff]   ;;  %v2906_v53 = vld [vmem:[%s3998_s23 + $0x1c] ss:$48 sps:$4 sm:$0xff]  }
 0x19d   : > { %v949_v56 = vpop.f32.mrf.mxu0 }
 0x19e   : > { %v950_v57 = vadd.f32 %v949_v56, %v879_v54  ;;  %v4048_v61 = vpack.c.bf16 %v948_v55, %v948_v55  ;;  %v1065_v54 = vld [vmem:[%s3998_s23 + $0x378] sm:$0xff] }
 0x19f   : > { %v2904_v55 = vld [vmem:[%s3998_s23 + $0x18] ss:$48 sps:$4 sm:$0xff]   ;;  %v2618_v56 = vcombine.high %v1065_v54, %v1065_v54 }
 0x1a0   : > { %v4044_v58 = vpack.c.bf16 %v950_v57, %v950_v57  ;;  %v2617_v57 = vcombine.low %v1065_v54, %v1065_v54 }
 0x1a2   : > { %2624 = vmatprep.mubr.msk.bf16.mxu1 %vm1702_vm1, %v4044_v58  ;;  %2628 = vmatprep.mubr.msk.bf16.mxu0 %vm1702_vm1, %v4044_v58 }
 0x1a3   : > { %1776 = vmatmul.mubr.bf16.vlgmr.msra.gmra.mxu1 %v4048_v61  ;;  %1858 = vmatmul.mubr.bf16.vlgmr.msra.gmra.mxu0 %v4048_v61 }
 0x1a4   : > { %1785 = vmatpush1.bf16.msra.mxu1 %v2825_v59  ;;  %1908 = vmatpush1.bf16.msra.mxu0 %v2828_v60  ;;  %v1726_v59 = vsel %vm1706_vm0, %v2617_v57, 0  ;;  %v2911_v60 = vld [vmem:[%s3998_s23 + $0x31c] ss:$48 sps:$4 sm:$0xff]   ;;  %v2964_v57 = vld [vmem:[%s4151_s7 + $0xa0] sm:$0xff]  }
 0x1a5   : > { %2626 = vmatprep.mubr.msk.bf16.mxu1 %vm1702_vm1, %v4044_v58  ;;  %2632 = vmatprep.mubr.msk.bf16.mxu0 %vm1702_vm1, %v4044_v58 }
 0x1a6   : > { %1786 = vmatprep.subr.bf16.mxu1 %v2833_v62  ;;  %1909 = vmatprep.subr.bf16.mxu0 %v2836_v0  ;;  %v2909_v62 = vld [vmem:[%s3998_s23 + $0x318] ss:$48 sps:$4 sm:$0xff]   ;;  %v2914_v0 = vld [vmem:[%s3998_s23 + $0x2cc] ss:$48 sps:$4 sm:$0xff]  }
 0x1a8   : > { %1787 = vmatpush1.bf16.msra.mxu1 %v2831_v1  ;;  %1910 = vmatpush1.bf16.msra.mxu0 %v2834_v2  ;;  %v2912_v1 = vld [vmem:[%s3998_s23 + $0x2c8] ss:$48 sps:$4 sm:$0xff]   ;;  %v2917_v2 = vld [vmem:[%s3998_s23 + $0x26c] ss:$48 sps:$4 sm:$0xff]  }
 0x1a9   : > { %1788 = vmatprep.subr.bf16.mxu1 %v2839_v3  ;;  %1911 = vmatprep.subr.bf16.mxu0 %v2842_v63  ;;  %v2915_v3 = vld [vmem:[%s3998_s23 + $0x268] ss:$48 sps:$4 sm:$0xff]   ;;  %v2920_v63 = vld [vmem:[%s3998_s23 + $0x20c] ss:$48 sps:$4 sm:$0xff]  }
 0x1ac   : > { %1789 = vmatpush1.bf16.msra.mxu1 %v2837_v4  ;;  %1912 = vmatpush1.bf16.msra.mxu0 %v2840_v5  ;;  %v2918_v4 = vld [vmem:[%s3998_s23 + $0x208] ss:$48 sps:$4 sm:$0xff]   ;;  %v2923_v5 = vld [vmem:[%s3998_s23 + $0x1ac] ss:$48 sps:$4 sm:$0xff]  }
 0x1ad   : > { %1790 = vmatprep.subr.bf16.mxu1 %v2845_v6  ;;  %1913 = vmatprep.subr.bf16.mxu0 %v2848_v7  ;;  %v2921_v6 = vld [vmem:[%s3998_s23 + $0x1a8] ss:$48 sps:$4 sm:$0xff]   ;;  %v2926_v7 = vld [vmem:[%s3998_s23 + $0x14c] ss:$48 sps:$4 sm:$0xff]  }
 0x1b0   : > { %1791 = vmatpush1.bf16.msra.mxu1 %v2843_v8  ;;  %1914 = vmatpush1.bf16.msra.mxu0 %v2846_v9  ;;  %v2924_v8 = vld [vmem:[%s3998_s23 + $0x148] ss:$48 sps:$4 sm:$0xff]  }
 0x1b1   : > { %1792 = vmatprep.subr.bf16.mxu1 %v2851_v10  ;;  %1915 = vmatprep.subr.bf16.mxu0 %v2854_v11  ;;  %v2927_v9 = vld [vmem:[%s3998_s23 + $0xe8] ss:$48 sps:$4 sm:$0xff]   ;;  %v2932_v10 = vld [vmem:[%s3998_s23 + $0x8c] ss:$48 sps:$4 sm:$0xff]  }
 0x1b2   : > { %v2930_v11 = vld [vmem:[%s3998_s23 + $0x88] ss:$48 sps:$4 sm:$0xff]  }
 0x1b4   : > { %1793 = vmatpush1.bf16.msra.mxu1 %v2849_v12  ;;  %1916 = vmatpush1.bf16.msra.mxu0 %v2852_v13  ;;  %v2935_v12 = vld [vmem:[%s3998_s23 + $0x2c] ss:$48 sps:$4 sm:$0xff]  }
 0x1b5   : > { %1794 = vmatprep.subr.bf16.mxu1 %v2857_v14  ;;  %1917 = vmatprep.subr.bf16.mxu0 %v2860_v15  ;;  %v1067_v13 = vld [vmem:[%s3998_s23 + $0x388] sm:$0xff] }
 0x1b6   : > { %v2933_v14 = vld [vmem:[%s3998_s23 + $0x28] ss:$48 sps:$4 sm:$0xff]   ;;  %v2622_v15 = vcombine.high %v1067_v13, %v1067_v13 }
 0x1b8   : > { %1795 = vmatpush1.bf16.msra.mxu1 %v2855_v16  ;;  %1918 = vmatpush1.bf16.msra.mxu0 %v2858_v17  ;;  %v2621_v16 = vcombine.low %v1067_v13, %v1067_v13 }
 0x1b9   : > { %1796 = vmatprep.subr.bf16.mxu1 %v2863_v18  ;;  %1919 = vmatprep.subr.bf16.mxu0 %v2866_v19  ;;  %v2940_v18 = vld [vmem:[%s3998_s23 + $0x32c] ss:$48 sps:$4 sm:$0xff]   ;;  %v2938_v19 = vld [vmem:[%s3998_s23 + $0x328] ss:$48 sps:$4 sm:$0xff]  }
 0x1ba   : > { %v1738_v17 = vsel %vm1706_vm0, %v2621_v16, 0 }
 0x1bc   : > { %1797 = vmatpush1.bf16.msra.mxu1 %v2861_v20  ;;  %1920 = vmatpush1.bf16.msra.mxu0 %v2864_v21  ;;  %v2941_v20 = vld [vmem:[%s4151_s7 + $0x78] sm:$0xff]  }
 0x1bd   : > { %1798 = vmatprep.subr.bf16.mxu1 %v2869_v22  ;;  %1921 = vmatprep.subr.bf16.mxu0 %v2872_v23  ;;  %v2942_v21 = vld [vmem:[%s4151_s7 + $0x38] sm:$0xff]   ;;  %v2943_v22 = vld [vmem:[%s4151_s7 + $0x70] sm:$0xff]  }
 0x1be   : > { %v2944_v23 = vld [vmem:[%s4151_s7 + $0x30] sm:$0xff]  }
 0x1c0   : > { %1799 = vmatpush1.bf16.msra.mxu1 %v2867_v26  ;;  %1922 = vmatpush1.bf16.msra.mxu0 %v2870_v27  ;;  %v2947_v26 = vld [vmem:[%s4151_s7 + $0x60] sm:$0xff]  }
 0x1c1   : > { %2625 = vmatprep.subr.msk.bf16.mxu1 %vm1706_vm0, %v2614_v29  ;;  %2631 = vmatprep.subr.msk.bf16.mxu0 %vm1706_vm0, %v2620_v30  ;;  %v2948_v27 = vld [vmem:[%s4151_s7 + $0x20] sm:$0xff]   ;;  %v2949_v29 = vld [vmem:[%s4151_s7 + $0x58] sm:$0xff]  }
 0x1c2   : > { %v2950_v30 = vld [vmem:[%s4151_s7 + $0x18] sm:$0xff]  }
 0x1c4   : > { %1813 = vmatpush2.bf16.msra.mxu1 %v1714_v33  ;;  %1936 = vmatpush2.bf16.msra.mxu0 %v1732_v34  ;;  %v2953_v33 = vld [vmem:[%s4151_s7 + $0x48] sm:$0xff]   ;;  %v2955_v34 = vld [vmem:[%s4151_s7 + $0x40] sm:$0xff]  }
 0x1c5   : > { %1814 = vmatprep.subr.bf16.mxu1 %v2879_v35  ;;  %1937 = vmatprep.subr.bf16.mxu0 %v2882_v36  ;;  %v2956_v35 = vld [vmem:[%s4151_s7] sm:$0xff]  }
 0x1c8   : > { %1815 = vmatpush2.bf16.msra.mxu1 %v2877_v37  ;;  %1938 = vmatpush2.bf16.msra.mxu0 %v2880_v38  ;;  %v2957_v38 = vld [vmem:[%s4151_s7 + $0xf8] sm:$0xff]  }
 0x1c9   : > { %1866 = vmatprep.subr.bf16.mxu1 %v2885_v39  ;;  %2680 = vmatprep.subr.bf16.mxu0 %v2941_v20 }
 0x1cb   : > { %1817 = vmatmul.mubr.bf16.vlgmr.msra.gmra.mxu1 %v4048_v61  ;;  %1940 = vmatmul.mubr.bf16.vlgmr.msra.gmra.mxu0 %v4048_v61 }
 0x1cc   : > { %1867 = vmatpush1.bf16.msra.mxu1 %v2883_v40  ;;  %2630 = vmatprep.mubr.msk.bf16.mxu1 %vm1702_vm1, %v4044_v58 }
 0x1cd   : > { %1868 = vmatprep.subr.bf16.mxu1 %v2888_v41  ;;  %2681 = vmatpush3.bf16.msra.mxu0 %v2942_v21  ;;  %v2958_v41 = vld [vmem:[%s4151_s7 + $0xb8] sm:$0xff]  }
 0x1ce   : > { %2682 = vmatprep.subr.bf16.mxu0 %v2943_v22 }
 0x1d0   : > { %1869 = vmatpush1.bf16.msra.mxu1 %v2886_v42 }
 0x1d1   : > { %1870 = vmatprep.subr.bf16.mxu1 %v2891_v43  ;;  %2683 = vmatpush3.bf16.msra.mxu0 %v2944_v23 }
 0x1d2   : > { %2684 = vmatprep.subr.bf16.mxu0 %v2945_v24 }
 0x1d4   : > { %1871 = vmatpush1.bf16.msra.mxu1 %v2889_v44  ;;  %v1074_v44 = vsub.s32 0, %v3710_v28 }
 0x1d5   : > { %1872 = vmatprep.subr.bf16.mxu1 %v2894_v45  ;;  %2685 = vmatpush3.bf16.msra.mxu0 %v2946_v25  ;;  %v2959_v45 = vld [vmem:[%s4151_s7 + $0xf0] sm:$0xff]  }
 0x1d6   : > { %2686 = vmatprep.subr.bf16.mxu0 %v2947_v26 }
 0x1d8   : > { %1873 = vmatpush1.bf16.msra.mxu1 %v2892_v46  ;;  %v4183_v46 = vld [vmem:[%s4178_s11] sm:$0xff] }
 0x1d9   : > { %1874 = vmatprep.subr.bf16.mxu1 %v2897_v47  ;;  %2687 = vmatpush3.bf16.msra.mxu0 %v2948_v27 }
 0x1da   : > { %2688 = vmatprep.subr.bf16.mxu0 %v2949_v29 }
 0x1dc   : > { %1875 = vmatpush1.bf16.msra.mxu1 %v2895_v48 }
 0x1dd   : > { %1876 = vmatprep.subr.bf16.mxu1 %v2900_v49  ;;  %2689 = vmatpush3.bf16.msra.mxu0 %v2950_v30  ;;  %v2960_v49 = vld [vmem:[%s4151_s7 + $0xb0] sm:$0xff]  }
 0x1de   : > { %2690 = vmatprep.subr.bf16.mxu0 %v2951_v31 }
 0x1e0   : > { %1877 = vmatpush1.bf16.msra.mxu1 %v2898_v50  ;;  %v1078_v50 = vsub.s32 1, %v3710_v28 }
 0x1e1   : > { %1878 = vmatprep.subr.bf16.mxu1 %v2903_v51  ;;  %2691 = vmatpush3.bf16.msra.mxu0 %v2952_v32  ;;  %v1075_v51 = vrot.slane %v4183_v46, %v1074_v44 }
 0x1e2   : > { %2692 = vmatprep.subr.bf16.mxu0 %v2953_v33  ;;  %v1079_v54 = vrot.slane %v4183_v46, %v1078_v50 }
 0x1e4   : > { %1879 = vmatpush1.bf16.msra.mxu1 %v2901_v52  ;;  %v2961_v52 = vld [vmem:[%s4151_s7 + $0xe8] sm:$0xff]  }
 0x1e5   : > { %1880 = vmatprep.subr.bf16.mxu1 %v2906_v53  ;;  %v2962_v53 = vld [vmem:[%s4151_s7 + $0xa8] sm:$0xff]  }
 0x1e8   : > { %1881 = vmatpush1.bf16.msra.mxu1 %v2904_v55 }
 0x1e9   : > { %2629 = vmatprep.subr.msk.bf16.mxu1 %vm1706_vm0, %v2618_v56  ;;  %v2963_v56 = vld [vmem:[%s4151_s7 + $0xe0] sm:$0xff]  }
 0x1ec   : > { %1895 = vmatpush2.bf16.msra.mxu1 %v1726_v59 }
 0x1ed   : > { %1896 = vmatprep.subr.bf16.mxu1 %v2911_v60  ;;  %v2965_v60 = vld [vmem:[%s4151_s7 + $0xd8] sm:$0xff]  }
 0x1f0   : > { %1897 = vmatpush2.bf16.msra.mxu1 %v2909_v62  ;;  %v2966_v62 = vld [vmem:[%s4151_s7 + $0x98] sm:$0xff]  }
 0x1f1   : > { %1948 = vmatprep.subr.bf16.mxu1 %v2914_v0 }
 0x1f3   : > { %1899 = vmatmul.mubr.bf16.vlgmr.msra.gmra.mxu1 %v4048_v61 }
 0x1f4   : > { %1949 = vmatpush1.bf16.msra.mxu1 %v2912_v1  ;;  %2634 = vmatprep.mubr.msk.bf16.mxu1 %vm1702_vm1, %v4044_v58  ;;  %v2929_v58 = vld [vmem:[%s3998_s23 + $0xec] ss:$48 sps:$4 sm:$0xff]   ;;  %v2967_v1 = vld [vmem:[%s4151_s7 + $0xd0] sm:$0xff]  }
 0x1f5   : > { %1950 = vmatprep.subr.bf16.mxu1 %v2917_v2 }
 0x1f8   : > { %1951 = vmatpush1.bf16.msra.mxu1 %v2915_v3  ;;  %v2968_v3 = vld [vmem:[%s4151_s7 + $0x90] sm:$0xff]  }
 0x1f9   : > { %1952 = vmatprep.subr.bf16.mxu1 %v2920_v63  ;;  %v2969_v63 = vld [vmem:[%s4151_s7 + $0xc8] sm:$0xff]  }
 0x1fc   : > { %1953 = vmatpush1.bf16.msra.mxu1 %v2918_v4  ;;  %v2970_v4 = vld [vmem:[%s4151_s7 + $0x88] sm:$0xff]  }
 0x1fd   : > { %1954 = vmatprep.subr.bf16.mxu1 %v2923_v5  ;;  %v2971_v5 = vld [vmem:[%s4151_s7 + $0xc0] sm:$0xff]  }
 0x200   : > { %1955 = vmatpush1.bf16.msra.mxu1 %v2921_v6  ;;  %v2972_v6 = vld [vmem:[%s4151_s7 + $0x80] sm:$0xff]  }
 0x201   : > { %1956 = vmatprep.subr.bf16.mxu1 %v2926_v7  ;;  %v1090_v7 = vsub.s32 4, %v3710_v28 }
 0x204   : > { %1957 = vmatpush1.bf16.msra.mxu1 %v2924_v8  ;;  %v1094_v8 = vsub.s32 5, %v3710_v28 }
 0x205   : > { %1958 = vmatprep.subr.bf16.mxu1 %v2929_v58 }
 0x206   : > { %v1095_v13 = vrot.slane %v4183_v46, %v1094_v8 }
 0x208   : > { %1959 = vmatpush1.bf16.msra.mxu1 %v2927_v9  ;;  %v1091_v9 = vrot.slane %v4183_v46, %v1090_v7 }
 0x209   : > { %1960 = vmatprep.subr.bf16.mxu1 %v2932_v10  ;;  %v4205_v10 = vld [vmem:[%s4178_s11 + $0x8] sm:$0xf] }
 0x20c   : > { %1961 = vmatpush1.bf16.msra.mxu1 %v2930_v11 }
 0x20d   : > { %1962 = vmatprep.subr.bf16.mxu1 %v2935_v12 }
 0x210   : > { %1963 = vmatpush1.bf16.msra.mxu1 %v2933_v14  ;;  %v1107_v14 = vrot.slane %v4205_v10, %v1074_v44 }
 0x211   : > { %2633 = vmatprep.subr.msk.bf16.mxu1 %vm1706_vm0, %v2622_v15 }
 0x214   : > { %1977 = vmatpush2.bf16.msra.mxu1 %v1738_v17  ;;  %v1111_v17 = vrot.slane %v4205_v10, %v1078_v50 }
 0x215   : > { %1978 = vmatprep.subr.bf16.mxu1 %v2940_v18 }
 0x218   : > { %1979 = vmatpush2.bf16.msra.mxu1 %v2938_v19 }
 0x219   : > { %2702 = vmatprep.subr.bf16.mxu1 %v2957_v38 }
 0x21b   : > { %1981 = vmatmul.mubr.bf16.vlgmr.msra.gmra.mxu1 %v4048_v61  ;;  %v2954_v61 = vld [vmem:[%s4151_s7 + $0x8] sm:$0xff]   ;;  %s3027_s7 = scalar_lea.vmem %s3026_s6, 64 }
 0x21c   : > { %2693 = vmatpush3.bf16.msra.mxu0 %v2954_v61  ;;  %2703 = vmatpush3.bf16.msra.mxu1 %v2958_v41  ;;  %p3029_p5 = scmp.lt.s32.totalorder %s3027_s7, %s3021_s30 }
 0x21d   : > { %2694 = vmatprep.subr.bf16.mxu0 %v2955_v34  ;;  %2704 = vmatprep.subr.bf16.mxu1 %v2959_v45 }
 0x21e   : > { %p3030_p7 = por %p3029_p5, %p3028_p4 }
 0x220   : > { %2695 = vmatpush3.bf16.msra.mxu0 %v2956_v35  ;;  %2705 = vmatpush3.bf16.msra.mxu1 %v2960_v49  ;;  %p3031_p10 = pnand %p3030_p7, %p3024_p3 }
 0x221   : > { %2706 = vmatprep.subr.bf16.mxu1 %v2961_v52 }
 0x224   : > { %2707 = vmatpush3.bf16.msra.mxu1 %v2962_v53  ;;  %v1082_v53 = vsub.s32 2, %v3710_v28 }
 0x225   : > { %2708 = vmatprep.subr.bf16.mxu1 %v2963_v56 }
 0x226   : > { %v1083_v56 = vrot.slane %v4183_v46, %v1082_v53  ;;  %v1115_v8 = vrot.slane %v4205_v10, %v1082_v53 }
 0x228   : > { %2709 = vmatpush3.bf16.msra.mxu1 %v2964_v57 }
 0x229   : > { %2710 = vmatprep.subr.bf16.mxu1 %v2965_v60 }
 0x22c   : > { %2711 = vmatpush3.bf16.msra.mxu1 %v2966_v62 }
 0x22d   : > { %2712 = vmatprep.subr.bf16.mxu1 %v2967_v1  ;;  %v1098_v1 = vsub.s32 6, %v3710_v28 }
 0x230   : > { %2713 = vmatpush3.bf16.msra.mxu1 %v2968_v3  ;;  %v1099_v3 = vrot.slane %v4183_v46, %v1098_v1 }
 0x231   : > { %2714 = vmatprep.subr.bf16.mxu1 %v2969_v63 }
 0x234   : > { %2715 = vmatpush3.bf16.msra.mxu1 %v2970_v4 }
 0x235   : > { %2716 = vmatprep.subr.bf16.mxu1 %v2971_v5 }
 0x238   : > { %2717 = vmatpush3.bf16.msra.mxu1 %v2972_v6 }
 0x263   : > { %v1777_v36 = vpop.f32.mrf.mxu1  ;;  %v1859_v37 = vpop.f32.mrf.mxu0 }
 0x264   : > { %v1778_v55 = vadd.f32 %v1777_v36, %v1075_v51  ;;  %v1860_v15 = vadd.f32 %v1859_v37, %v1091_v9 }
 0x265   : > { %v1779_v39 = vpop.f32.mrf.mxu1  ;;  %v4172_v40 = vpop.f32.mrf.mxu0 }
 0x266   : > { %v1780_v59 = vadd.f32 %v1779_v39, %v1079_v54  ;;  %v2635_v0 = vmul.f32 -1.442695, %v1778_v55  ;;  %v1862_v20 = vadd.f32 %v4172_v40, %v1095_v13  ;;  %v1086_v55 = vsub.s32 3, %v3710_v28 }
 0x267   : > { %v1781_v42 = vpop.f32.mrf.mxu1  ;;  %v1863_v43 = vpop.f32.mrf.mxu0 }
 0x268   : > { %v2636_v2 = vmul.f32 -1.442695, %v1780_v59  ;;  %2973 = vpow2.f32 %v2635_v0  ;;  %v1087_v57 = vrot.slane %v4183_v46, %v1086_v55  ;;  %v1119_v9 = vrot.slane %v4205_v10, %v1086_v55 }
 0x269   : > { %v1782_v47 = vpop.f32.mrf.mxu1  ;;  %v1864_v48 = vpop.f32.mrf.mxu0 }
 0x26a   : > { %2975 = vpow2.f32 %v2636_v2  ;;  %v1102_v2 = vsub.s32 7, %v3710_v28 }
 0x26c   : > { %v1103_v4 = vrot.slane %v4183_v46, %v1102_v2 }
 0x275   : > { %v2974_v58 = vpop.eup %2973 }
 0x276   : > { %v2001_v12 = vadd.f32 1.0, %v2974_v58 }
 0x277   : > { %v2976_v11 = vpop.eup %2975 }
 0x278   : > { %v2002_v16 = vadd.f32 1.0, %v2976_v11  ;;  %2977 = vrcp.f32 %v2001_v12 }
 0x279   : > { %2979 = vtanh.f32 %v1860_v15 }
 0x27a   : > { %2981 = vrcp.f32 %v2002_v16 }
 0x27b   : > { %2983 = vtanh.f32 %v1862_v20 }
 0x285   : > { %v2978_v32 = vpop.eup %2977 }
 0x286   : > { %v2980_v33 = vpop.eup %2979 }
 0x287   : > { %v2982_v61 = vpop.eup %2981  ;;  %v2041_v34 = vmul.f32 %v2980_v33, %v2978_v32 }
 0x288   : > { %v2984_v35 = vpop.eup %2983 }
 0x289   : > { %v2042_v37 = vmul.f32 %v2984_v35, %v2982_v61 }
 0x28b   : > { %v1818_v18 = vpop.f32.mrf.mxu1  ;;  %v1941_v19 = vpop.f32.mrf.mxu0 }
 0x28c   : > { %v1942_v21 = vadd.f32 %v1941_v19, %v1107_v14  ;;  %v1819_v59 = vadd.f32 %v1818_v18, %v1083_v56 }
 0x28d   : > { %v1820_v22 = vpop.f32.mrf.mxu1  ;;  %v1943_v23 = vpop.f32.mrf.mxu0 }
 0x28e   : > { %v2639_v24 = vmul.f32 -1.442695, %v1942_v21  ;;  %v1944_v25 = vadd.f32 %v1943_v23, %v1111_v17  ;;  %v1821_v60 = vadd.f32 %v1820_v22, %v1087_v57  ;;  %v2637_v62 = vmul.f32 -1.442695, %v1819_v59 }
 0x28f   : > { %v1822_v26 = vpop.f32.mrf.mxu1  ;;  %v1945_v27 = vpop.f32.mrf.mxu0 }
 0x290   : > { %v2640_v29 = vmul.f32 -1.442695, %v1944_v25  ;;  %2985 = vpow2.f32 %v2639_v24  ;;  %v2638_v0 = vmul.f32 -1.442695, %v1821_v60 }
 0x291   : > { %v1823_v30 = vpop.f32.mrf.mxu1  ;;  %v1946_v31 = vpop.f32.mrf.mxu0 }
 0x292   : > { %2987 = vpow2.f32 %v2640_v29 }
 0x293   : > { %2989 = vtanh.f32 %v2041_v34 }
 0x29d   : > { %v2986_v36 = vpop.eup %2985 }
 0x29e   : > { %v2029_v38 = vadd.f32 1.0, %v2986_v36 }
 0x29f   : > { %v2988_v39 = vpop.eup %2987 }
 0x2a0   : > { %2991 = vrcp.f32 %v2029_v38  ;;  %v2030_v40 = vadd.f32 1.0, %v2988_v39  ;;  %v2990_v41 = vpop.eup %2989 }
 0x2a1   : > { %2993 = vtanh.f32 %v2042_v37 }
 0x2a2   : > { %2995 = vrcp.f32 %v2030_v40 }
 0x2a3   : > { %2997 = vpow2.f32 %v2637_v62 }
 0x2a4   : > { %2999 = vpow2.f32 %v2638_v0 }
 0x2ad   : > { %v2992_v42 = vpop.eup %2991 }
 0x2ae   : > { %v2994_v43 = vpop.eup %2993  ;;  %v2049_v45 = vmul.f32 %v2992_v42, %v2990_v41 }
 0x2af   : > { %v2996_v44 = vpop.eup %2995 }
 0x2b0   : > { %v2050_v47 = vmul.f32 %v2996_v44, %v2994_v43  ;;  %v2053_v50 = vpack.c.bf16 %v2049_v45, %v2049_v45  ;;  %v2998_v63 = vpop.eup %2997 }
 0x2b1   : > { %v3000_v6 = vpop.eup %2999  ;;  %v2003_v7 = vadd.f32 1.0, %v2998_v63 }
 0x2b2   : > { %v2054_v49 = vpack.c.bf16 %v2050_v47, %v2050_v47  ;;  %v2004_v11 = vadd.f32 1.0, %v3000_v6 }
 0x2b3   : > { %v1900_v48 = vpop.f32.mrf.mxu1 }
 0x2b4   : > { %2345 = vmatprep.mubr.bf16.mxu0 %v2054_v49  ;;  %v1901_v5 = vadd.f32 %v1900_v48, %v1099_v3 }
 0x2b5   : > { %v1902_v51 = vpop.f32.mrf.mxu1  ;;  %2346 = vmatmul.mubr.bf16.vlgmr.msra.gmra.mxu0 %v2053_v50 }
 0x2b6   : > { %v1903_v58 = vadd.f32 %v1902_v51, %v1103_v4  ;;  %3001 = vtanh.f32 %v1901_v5 }
 0x2b7   : > { %v1904_v52 = vpop.f32.mrf.mxu1  ;;  %3003 = vrcp.f32 %v2003_v7 }
 0x2b8   : > { %3005 = vtanh.f32 %v1903_v58 }
 0x2b9   : > { %v1905_v54 = vpop.f32.mrf.mxu1  ;;  %3007 = vrcp.f32 %v2004_v11 }
 0x2c3   : > { %v3002_v18 = vpop.eup %3001 }
 0x2c4   : > { %v3004_v19 = vpop.eup %3003 }
 0x2c5   : > { %v3006_v20 = vpop.eup %3005  ;;  %v2043_v21 = vmul.f32 %v3004_v19, %v3002_v18 }
 0x2c6   : > { %v3008_v10 = vpop.eup %3007 }
 0x2c7   : > { %v2044_v23 = vmul.f32 %v3008_v10, %v3006_v20 }
 0x2db   : > { %v1982_v12 = vpop.f32.mrf.mxu1 }
 0x2dc   : > { %v1983_v13 = vadd.f32 %v1982_v12, %v1115_v8 }
 0x2dd   : > { %v1984_v28 = vpop.f32.mrf.mxu1 }
 0x2de   : > { %v2641_v14 = vmul.f32 -1.442695, %v1983_v13  ;;  %v1985_v15 = vadd.f32 %v1984_v28, %v1119_v9 }
 0x2df   : > { %v1986_v16 = vpop.f32.mrf.mxu1 }
 0x2e0   : > { %3009 = vpow2.f32 %v2641_v14  ;;  %v2642_v46 = vmul.f32 -1.442695, %v1985_v15 }
 0x2e1   : > { %v1987_v17 = vpop.f32.mrf.mxu1 }
 0x2e2   : > { %3011 = vpow2.f32 %v2642_v46 }
 0x2e3   : > { %3013 = vtanh.f32 %v2043_v21 }
 0x2ed   : > { %v3010_v22 = vpop.eup %3009 }
 0x2ee   : > { %v2031_v24 = vadd.f32 1.0, %v3010_v22 }
 0x2ef   : > { %v3012_v25 = vpop.eup %3011 }
 0x2f0   : > { %3015 = vrcp.f32 %v2031_v24  ;;  %v2032_v26 = vadd.f32 1.0, %v3012_v25  ;;  %v3014_v27 = vpop.eup %3013 }
 0x2f1   : > { %3017 = vtanh.f32 %v2044_v23 }
 0x2f2   : > { %3019 = vrcp.f32 %v2032_v26 }
 0x2fd   : > { %v3016_v29 = vpop.eup %3015 }
 0x2fe   : > { %v3018_v30 = vpop.eup %3017  ;;  %v2051_v32 = vmul.f32 %v3016_v29, %v3014_v27 }
 0x2ff   : > { %v3020_v31 = vpop.eup %3019 }
 0x300   : > { %v2052_v33 = vmul.f32 %v3020_v31, %v3018_v30  ;;  %v2055_v34 = vpack.c.bf16 %v2051_v32, %v2051_v32 }
 0x302   : > { %v2056_v61 = vpack.c.bf16 %v2052_v33, %v2052_v33 }
 0x304   : > { %2385 = vmatprep.mubr.bf16.mxu1 %v2056_v61 }
 0x305   : > { %2386 = vmatmul.mubr.bf16.vlgmr.msra.gmra.mxu1 %v2055_v34 }
 0x375   : > { %v2696_v35 = vpop.f32.mrf.mxu0 }
 0x377   : > { %v2697_v36 = vpop.f32.mrf.mxu0 }
 0x378   : > { %v2698_v37 = vadd.f32 %v2697_v36, %v2696_v35 }
 0x379   : > { %v2699_v38 = vpop.f32.mrf.mxu0 }
 0x37b   : > { %v2700_v39 = vpop.f32.mrf.mxu0 }
 0x3c5   : > { %v2718_v40 = vpop.f32.mrf.mxu1 }
 0x3c7   : > { %v2719_v41 = vpop.f32.mrf.mxu1 }
 0x3c8   : > { %v2720_v42 = vadd.f32 %v2719_v41, %v2718_v40 }
 0x3c9   : > { %v2721_v43 = vpop.f32.mrf.mxu1 }
 0x3ca   : > { %v2388_v44 = vadd.f32 %v2720_v42, %v2698_v37 }
 0x3cb   : > { %v2722_v45 = vpop.f32.mrf.mxu1 }
 0x3cc   : > { %2393 = vst [vmem:[%s498_s14] sm:$0x3] %v2388_v44 }
 0x3cd   : > { %3034 = shalt.err (!%p3031_p10)
}
 0x3ce   : > { %s3035_s8 = scalar_lea.hbm %s4226_s25, 32  ;;  %s3039_s10 = scalar_lea.hbm %s4268_s5, 64 }
 0x3cf   : > { %p3036_p11 = scmp.ne.s32.totalorder %s4226_s25, %s3035_s8  ;;  %p3040_p0 = scmp.lt.s32.totalorder %s4226_s25, %s4268_s5 }
 0x3d0   : > { %p3041_p1 = scmp.lt.s32.totalorder %s3039_s10, %s3035_s8 }
 0x3d1   : > { %p3037_p12 = pnand %p3036_p11, %p3154_p6 }
 0x3d2   : > { %p3042_p2 = por %p3041_p1, %p3040_p0 }
 0x3d3   : > { %p3038_p13 = pneg %p3037_p12 }
 0x3d5   : > { %p3043_p3 = pnand %p3042_p2, %p3038_p13 }
 0x3d7   : > { %3046 = shalt.err (!%p3043_p3)
}
 0x3d8   : > { %2726 = dma.vmem_to_hbm [thread:$0]  (%p3154_p6), %s2409_s15, 32, %s4226_s25, %s2395_s26  }
 0x3d9 PF: > { %s2420_s13 = sand.u32 1, %s3069_s18   ;;  %p2729_p4 = pnand %p2496_p9, %p3158_p8 }
 0x3da   : > { %s2421_s14 = scalar_lea.sflag [#allocation4], %s2420_s13 }
 0x3db   : > { %p2730_p5 = pneg %p2729_p4 }
 0x3dd   : > { %3064 = dma.done.wait (%p2730_p5), %s2421_s14, 32  }
 0x3de   : > { %3066 = vsyncadd (%p2730_p5), %s2421_s14, 4294967264  ;;  %p15_p7 = scmp.ge.s32.totalorder %s3140_s24, 4   ;;  %s4271_s18 = smov %s3073_s19 }
 0x3df   : > { %s4272_s19 = smov %s3077_s20  ;;  %s4273_s20 = smov %s3152_s27 }
 0x3e0   : > { %s4274_s21 = smov %s3140_s24  ;;  %17 = sbr.rel (!%p15_p7) target bundleno = 3 (0x3), region = 109 }
 0x3e5   :  { %2426 = vsyncpa [#allocation4], 1 }
 0x3e6   :  { %2428 = vsyncpa [#allocation4 + $0x1], 1 }

</bundles_post_ra>
